<compile_context>
chip_gen: v7x
topology: tpu7x:2x2x1
jax: 0.10.0
libtpu: 0.0.40
codegen_flags: <defaults>
</compile_context>

<pallas_src>
import jax
import jax.numpy as jnp
from jax.experimental import pallas as pl
from jax.experimental.pallas import tpu as pltpu

# ----------------------- small synthetic config -----------------------
B, S, P = 2, 8, 8          # batch, new tokens, past (cached) tokens
D, H, L = 32, 4, 2         # hidden, heads, layers
FF, V = 64, 128            # mlp intermediate, vocab
HD = D // H                # head dim
T = P + S                  # total kv length
BS = B * S
EPS = 1e-6
NEG = -1e9                 # safe additive-mask value (finfo.min can NaN fully-masked rows)


# ----------------------------- kernels ---------------------------------
def _rope_rotate(t, cos, sin):
    """Rotary embedding applied head-block-wise on a [S, D] tile (heads contiguous)."""
    half = HD // 2
    outs = []
    for h in range(H):
        th = t[:, h * HD:(h + 1) * HD]
        t1 = th[:, :half]
        t2 = th[:, half:]
        rot = jnp.concatenate([-t2, t1], axis=-1)          # rotate_half
        outs.append(th * cos + rot * sin)
    return jnp.concatenate(outs, axis=-1)                  # [S, D]


def _layer_kernel(x_ref, am_ref, cos_ref, sin_ref, pk_ref, pv_ref,
                  ln1_ref, wqkv_ref, bqkv_ref, wo_ref,
                  ln2_ref, w1_ref, w2_ref, wp_ref,
                  xo_ref, ko_ref, vo_ref):
    # one grid step == one batch element; everything stays resident in VMEM/vregs.
    x = x_ref[...]                                          # [S, D] f32

    # --- RMSNorm 1 + fused QKV matmul (+bias) + RoPE ------------------------
    var = jnp.mean(x * x, axis=-1, keepdims=True)
    xn = x * jax.lax.rsqrt(var + EPS) * ln1_ref[...]
    qkv = jnp.dot(xn.astype(jnp.bfloat16), wqkv_ref[...],
                  preferred_element_type=jnp.float32) + bqkv_ref[...]     # [S, 3D] f32
    cos = cos_ref[...]                                      # [S, HD]
    sin = sin_ref[...]
    q = _rope_rotate(qkv[:, :D], cos, sin)                  # [S, D]
    k = _rope_rotate(qkv[:, D:2 * D], cos, sin)             # [S, D]
    v = qkv[:, 2 * D:]                                      # [S, D]

    # --- additive mask computed in-kernel (causal w.r.t. prefix + padding) --
    k_pos = jax.lax.broadcasted_iota(jnp.int32, (S, T), 1)
    q_pos = jax.lax.broadcasted_iota(jnp.int32, (S, T), 0) + P
    allow = jnp.logical_and(k_pos <= q_pos, am_ref[...] > 0.5)   # [S, T]
    add_mask = jnp.where(allow, 0.0, NEG).astype(jnp.float32)

    # --- attention per head; KV cache (past ++ new) written to outputs ------
    scale = 1.0 / (HD ** 0.5)
    head_outs = []
    for h in range(H):
        q_h = q[:, h * HD:(h + 1) * HD]                     # [S, HD]
        k_new = k[:, h * HD:(h + 1) * HD]
        v_new = v[:, h * HD:(h + 1) * HD]
        k_full = jnp.concatenate([pk_ref[h], k_new], axis=0)    # [T, HD] f32
        v_full = jnp.concatenate([pv_ref[h], v_new], axis=0)    # [T, HD] f32
        ko_ref[h] = k_full
        vo_ref[h] = v_full
        s = jax.lax.dot_general(
            q_h.astype(jnp.bfloat16), k_full.astype(jnp.bfloat16),
            (((1,), (1,)), ((), ())),
            preferred_element_type=jnp.float32) * scale + add_mask   # [S, T]
        s_max = jnp.max(s, axis=-1, keepdims=True)
        p = jnp.exp(s - s_max)
        p = p * pl.reciprocal(jnp.sum(p, axis=-1, keepdims=True), approx=True)
        head_outs.append(jnp.dot(p.astype(jnp.bfloat16), v_full.astype(jnp.bfloat16),
                                 preferred_element_type=jnp.float32))    # [S, HD]
    attn = jnp.concatenate(head_outs, axis=-1)              # [S, D]

    # --- output projection + residual ----------------------------------------
    x1 = x + jnp.dot(attn.astype(jnp.bfloat16), wo_ref[...],
                     preferred_element_type=jnp.float32)

    # --- RMSNorm 2 + SwiGLU MLP + residual ------------------------------------
    var2 = jnp.mean(x1 * x1, axis=-1, keepdims=True)
    xn2 = (x1 * jax.lax.rsqrt(var2 + EPS) * ln2_ref[...]).astype(jnp.bfloat16)
    a1 = jnp.dot(xn2, w1_ref[...], preferred_element_type=jnp.float32)
    a2 = jnp.dot(xn2, w2_ref[...], preferred_element_type=jnp.float32)
    hmid = a1 * (a2 * jax.nn.sigmoid(a2))                   # Qwen MLP: w1(x) * silu(w2(x))
    mlp = jnp.dot(hmid.astype(jnp.bfloat16), wp_ref[...],
                  preferred_element_type=jnp.float32)
    xo_ref[...] = (x1 + mlp).astype(xo_ref.dtype)


def _head_kernel(x_ref, lnf_ref, w_ref, o_ref):
    # final RMSNorm (last token only) + lm_head matmul; V=128 -> lane-dense output.
    x = x_ref[...]
    var = jnp.mean(x * x, axis=-1, keepdims=True)
    xn = x * jax.lax.rsqrt(var + EPS) * lnf_ref[...]
    o_ref[...] = jnp.dot(xn.astype(jnp.bfloat16), w_ref[...],
                         preferred_element_type=jnp.float32).astype(o_ref.dtype)


# --------------------------- kernel wrappers ----------------------------
def _layer_call(x, am, cos, sin, pk, pv, lp):
    in_specs = [
        pl.BlockSpec((S, D), lambda b: (b, 0)),                    # x        [BS, D]
        pl.BlockSpec((None, 1, T), lambda b: (b, 0, 0)),           # am       [B, 1, T]
        pl.BlockSpec((S, HD), lambda b: (b, 0)),                   # cos      [BS, HD]
        pl.BlockSpec((S, HD), lambda b: (b, 0)),                   # sin      [BS, HD]
        pl.BlockSpec((None, H, P, HD), lambda b: (b, 0, 0, 0)),    # past_k   [B, H, P, HD]
        pl.BlockSpec((None, H, P, HD), lambda b: (b, 0, 0, 0)),    # past_v   [B, H, P, HD]
        pl.BlockSpec((1, D), lambda b: (0, 0)),                    # ln_1
        pl.BlockSpec((D, 3 * D), lambda b: (0, 0)),                # c_attn_w (bf16)
        pl.BlockSpec((1, 3 * D), lambda b: (0, 0)),                # c_attn_b
        pl.BlockSpec((D, D), lambda b: (0, 0)),                    # attn_proj (bf16)
        pl.BlockSpec((1, D), lambda b: (0, 0)),                    # ln_2
        pl.BlockSpec((D, FF), lambda b: (0, 0)),                   # w1 (bf16)
        pl.BlockSpec((D, FF), lambda b: (0, 0)),                   # w2 (bf16)
        pl.BlockSpec((FF, D), lambda b: (0, 0)),                   # mlp_proj (bf16)
    ]
    out_specs = (
        pl.BlockSpec((S, D), lambda b: (b, 0)),                    # x_out   [BS, D]
        pl.BlockSpec((None, H, T, HD), lambda b: (b, 0, 0, 0)),    # k_cache [B, H, T, HD]
        pl.BlockSpec((None, H, T, HD), lambda b: (b, 0, 0, 0)),    # v_cache [B, H, T, HD]
    )
    out_shape = (
        jax.ShapeDtypeStruct((BS, D), jnp.float32),
        jax.ShapeDtypeStruct((B, H, T, HD), jnp.float32),
        jax.ShapeDtypeStruct((B, H, T, HD), jnp.float32),
    )
    return pl.pallas_call(
        _layer_kernel,
        grid=(B,),
        in_specs=in_specs,
        out_specs=out_specs,
        out_shape=out_shape,
        compiler_params=pltpu.CompilerParams(dimension_semantics=("parallel",)),
    )(x, am, cos, sin, pk, pv,
      lp['ln_1'], lp['c_attn_w'], lp['c_attn_b'], lp['attn_proj'],
      lp['ln_2'], lp['w1'], lp['w2'], lp['mlp_proj'])


def _head_call(x_last, lnf, w):
    return pl.pallas_call(
        _head_kernel,
        out_shape=jax.ShapeDtypeStruct((B, V), jnp.float32),
        in_specs=[pl.BlockSpec(memory_space=pltpu.MemorySpace.VMEM)] * 3,
        out_specs=pl.BlockSpec(memory_space=pltpu.MemorySpace.VMEM),
    )(x_last, lnf, w)


# ------------------------------ params ----------------------------------
def init_params(key):
    scale = 0.02
    keys = jax.random.split(key, 2 + L)
    params = {
        'wte': scale * jax.random.normal(keys[0], (V, D), jnp.float32),
        'ln_f': jnp.ones((1, D), jnp.float32),
        'lm_head': (scale * jax.random.normal(keys[1], (D, V), jnp.float32)
                    ).astype(jnp.bfloat16),
        'layers': [],
    }
    for l in range(L):
        kk = jax.random.split(keys[2 + l], 6)
        params['layers'].append({
            'ln_1': jnp.ones((1, D), jnp.float32),
            'c_attn_w': (scale * jax.random.normal(kk[0], (D, 3 * D), jnp.float32)
                         ).astype(jnp.bfloat16),
            'c_attn_b': scale * jax.random.normal(kk[1], (1, 3 * D), jnp.float32),
            'attn_proj': (scale * jax.random.normal(kk[2], (D, D), jnp.float32)
                          ).astype(jnp.bfloat16),
            'ln_2': jnp.ones((1, D), jnp.float32),
            'w1': (scale * jax.random.normal(kk[3], (D, FF), jnp.float32)
                   ).astype(jnp.bfloat16),
            'w2': (scale * jax.random.normal(kk[4], (D, FF), jnp.float32)
                   ).astype(jnp.bfloat16),
            'mlp_proj': (scale * jax.random.normal(kk[5], (FF, D), jnp.float32)
                         ).astype(jnp.bfloat16),
        })
    return params


def rope_tables(position_ids):
    # [B, S] -> cos/sin [B, S, HD]
    inv_freq = 1.0 / (10000.0 ** (jnp.arange(0, HD, 2, dtype=jnp.float32) / HD))
    freqs = position_ids[..., None].astype(jnp.float32) * inv_freq     # [B,S,HD/2]
    emb = jnp.concatenate([freqs, freqs], axis=-1)                     # [B,S,HD]
    return jnp.cos(emb), jnp.sin(emb)


# ------------------------------ forward ----------------------------------
def qwen_forward(params, input_ids, attention_mask, position_ids, past_key_values):
    """Mirrors QwenForCausalLMWrapper.forward: returns (lm_logits, *flat_kv_caches)."""
    x = params['wte'][input_ids].astype(jnp.float32).reshape(BS, D)    # glue gather
    cos, sin = rope_tables(position_ids)
    cos = cos.reshape(BS, HD)
    sin = sin.reshape(BS, HD)
    am = attention_mask.astype(jnp.float32).reshape(B, 1, T)

    kv_flat = []
    for l in range(L):
        pk, pv = past_key_values[l]                                    # [B,H,P,HD] each
        x, k_out, v_out = _layer_call(x, am, cos, sin, pk, pv, params['layers'][l])
        kv_flat.extend([k_out, v_out])                                 # [B,H,T,HD]

    x_last = x.reshape(B, S, D)[:, -1, :]                              # last token (glue)
    lm_logits = _head_call(x_last, params['ln_f'], params['lm_head'])  # [B, V]

    # TODO(synk): topk warper not emitted (args.add_topk_warper = 0); would be
    # plain jax.lax.top_k glue on lm_logits if enabled.
    return (lm_logits, *kv_flat)


# -------------------------------- main ------------------------------------
if __name__ == "__main__":
    key = jax.random.PRNGKey(0)
    pkey, ikey, kvkey = jax.random.split(key, 3)

    params = init_params(pkey)
    input_ids = jax.random.randint(ikey, (B, S), 0, V, dtype=jnp.int32)
    attention_mask = jnp.ones((B, T), dtype=jnp.int32)
    position_ids = jnp.broadcast_to(P + jnp.arange(S, dtype=jnp.int32), (B, S))

    kv_keys = jax.random.split(kvkey, 2 * L)
    past_key_values = []
    for l in range(L):
        pk = 0.02 * jax.random.normal(kv_keys[2 * l], (B, H, P, HD), jnp.float32)
        pv = 0.02 * jax.random.normal(kv_keys[2 * l + 1], (B, H, P, HD), jnp.float32)
        past_key_values.append((pk, pv))

    fwd = jax.jit(qwen_forward)
    outs = fwd(params, input_ids, attention_mask, position_ids, past_key_values)
    outs = jax.block_until_ready(outs)

    lm_logits = outs[0]
    assert lm_logits.shape == (B, V), lm_logits.shape
    assert len(outs) == 1 + 2 * L
    for kv in outs[1:]:
        assert kv.shape == (B, H, T, HD), kv.shape
    assert bool(jnp.all(jnp.isfinite(lm_logits)))
    print("KERNEL_OK")
</pallas_src>

<mosaic_0001>
module attributes {stable_mosaic.version = 11 : i64} {
  func.func @_head_kernel(%arg0: memref<2x32xf32, #tpu.memory_space<vmem>>, %arg1: memref<1x32xf32, #tpu.memory_space<vmem>>, %arg2: memref<32x128xbf16, #tpu.memory_space<vmem>>, %arg3: memref<2x128xf32, #tpu.memory_space<vmem>>) attributes {dimension_semantics = [], scalar_prefetch = 0 : i64, scratch_operands = 0 : i64, tpu.core_type = #tpu.core_type<tc>} {
    %c0 = arith.constant 0 : index
    %c0_0 = arith.constant 0 : index
    %0 = vector.load %arg0[%c0, %c0_0] : memref<2x32xf32, #tpu.memory_space<vmem>>, vector<2x32xf32>
    %1 = arith.mulf %0, %0 : vector<2x32xf32>
    %cst = arith.constant dense<0.000000e+00> : vector<2xf32>
    %2 = vector.multi_reduction <add>, %1, %cst [1] : vector<2x32xf32> to vector<2xf32>
    %3 = vector.shape_cast %2 : vector<2xf32> to vector<2x1xf32>
    %cst_1 = arith.constant 3.200000e+01 : f32
    %4 = vector.broadcast %cst_1 : f32 to vector<2x1xf32>
    %5 = arith.divf %3, %4 : vector<2x1xf32>
    %cst_2 = arith.constant 9.99999997E-7 : f32
    %6 = vector.broadcast %cst_2 : f32 to vector<2x1xf32>
    %7 = arith.addf %5, %6 : vector<2x1xf32>
    %8 = math.rsqrt %7 : vector<2x1xf32>
    %9 = vector.broadcast %8 : vector<2x1xf32> to vector<2x32xf32>
    %10 = arith.mulf %0, %9 : vector<2x32xf32>
    %c0_3 = arith.constant 0 : index
    %c0_4 = arith.constant 0 : index
    %11 = vector.load %arg1[%c0_3, %c0_4] : memref<1x32xf32, #tpu.memory_space<vmem>>, vector<1x32xf32>
    %12 = vector.broadcast %11 : vector<1x32xf32> to vector<2x32xf32>
    %13 = arith.mulf %10, %12 : vector<2x32xf32>
    %14 = arith.truncf %13 : vector<2x32xf32> to vector<2x32xbf16>
    %c0_5 = arith.constant 0 : index
    %c0_6 = arith.constant 0 : index
    %15 = vector.load %arg2[%c0_5, %c0_6] : memref<32x128xbf16, #tpu.memory_space<vmem>>, vector<32x128xbf16>
    %cst_7 = arith.constant dense<0.000000e+00> : vector<2x128xf32>
    %16 = tpu.matmul %14, %15, %cst_7 {dimension_numbers = #tpu.dot_dimension_numbers<[1], [0], [0], [1], [0, 0, 1, 1], [], []>} : vector<2x32xbf16>, vector<32x128xbf16>, vector<2x128xf32> -> vector<2x128xf32>
    %c0_8 = arith.constant 0 : index
    %c0_9 = arith.constant 0 : index
    %17 = vector.load %arg3[%c0_8, %c0_9] : memref<2x128xf32, #tpu.memory_space<vmem>>, vector<2x128xf32>
    tpu.vector_store %arg3[%c0_8, %c0_9], %16 {strides = array<i32>} : memref<2x128xf32, #tpu.memory_space<vmem>>, vector<2x128xf32>,
    return
  }
}

module attributes {stable_mosaic.version = 11 : i64} {
  func.func @_layer_kernel(%arg0: i32, %arg1: memref<8x32xf32, #tpu.memory_space<vmem>>, %arg2: memref<1x1x16xf32, #tpu.memory_space<vmem>>, %arg3: memref<8x8xf32, #tpu.memory_space<vmem>>, %arg4: memref<8x8xf32, #tpu.memory_space<vmem>>, %arg5: memref<1x4x8x8xf32, #tpu.memory_space<vmem>>, %arg6: memref<1x4x8x8xf32, #tpu.memory_space<vmem>>, %arg7: memref<1x32xf32, #tpu.memory_space<vmem>>, %arg8: memref<32x96xbf16, #tpu.memory_space<vmem>>, %arg9: memref<1x96xf32, #tpu.memory_space<vmem>>, %arg10: memref<32x32xbf16, #tpu.memory_space<vmem>>, %arg11: memref<1x32xf32, #tpu.memory_space<vmem>>, %arg12: memref<32x64xbf16, #tpu.memory_space<vmem>>, %arg13: memref<32x64xbf16, #tpu.memory_space<vmem>>, %arg14: memref<64x32xbf16, #tpu.memory_space<vmem>>, %arg15: memref<8x32xf32, #tpu.memory_space<vmem>>, %arg16: memref<1x4x16x8xf32, #tpu.memory_space<vmem>>, %arg17: memref<1x4x16x8xf32, #tpu.memory_space<vmem>>) attributes {dimension_semantics = [#tpu.dimension_semantics<parallel>], iteration_bounds = array<i64: 2>, scalar_prefetch = 0 : i64, scratch_operands = 0 : i64, tpu.core_type = #tpu.core_type<tc>, window_params = [{transform_indices = @transform_0, window_bounds = array<i64: 8, 32>}, {transform_indices = @transform_1, window_bounds = array<i64: 1, 1, 16>}, {transform_indices = @transform_2, window_bounds = array<i64: 8, 8>}, {transform_indices = @transform_3, window_bounds = array<i64: 8, 8>}, {transform_indices = @transform_4, window_bounds = array<i64: 1, 4, 8, 8>}, {transform_indices = @transform_5, window_bounds = array<i64: 1, 4, 8, 8>}, {pipeline_mode = #tpu.pipeline_mode<synchronous>, transform_indices = @transform_6, window_bounds = array<i64: 1, 32>}, {pipeline_mode = #tpu.pipeline_mode<synchronous>, transform_indices = @transform_7, window_bounds = array<i64: 32, 96>}, {pipeline_mode = #tpu.pipeline_mode<synchronous>, transform_indices = @transform_8, window_bounds = array<i64: 1, 96>}, {pipeline_mode = #tpu.pipeline_mode<synchronous>, transform_indices = @transform_9, window_bounds = array<i64: 32, 32>}, {pipeline_mode = #tpu.pipeline_mode<synchronous>, transform_indices = @transform_10, window_bounds = array<i64: 1, 32>}, {pipeline_mode = #tpu.pipeline_mode<synchronous>, transform_indices = @transform_11, window_bounds = array<i64: 32, 64>}, {pipeline_mode = #tpu.pipeline_mode<synchronous>, transform_indices = @transform_12, window_bounds = array<i64: 32, 64>}, {pipeline_mode = #tpu.pipeline_mode<synchronous>, transform_indices = @transform_13, window_bounds = array<i64: 64, 32>}, {transform_indices = @transform_14, window_bounds = array<i64: 8, 32>}, {transform_indices = @transform_15, window_bounds = array<i64: 1, 4, 16, 8>}, {transform_indices = @transform_16, window_bounds = array<i64: 1, 4, 16, 8>}]} {
    %c0 = arith.constant 0 : index
    %c0_0 = arith.constant 0 : index
    %0 = vector.load %arg1[%c0, %c0_0] : memref<8x32xf32, #tpu.memory_space<vmem>>, vector<8x32xf32>
    %1 = arith.mulf %0, %0 : vector<8x32xf32>
    %cst = arith.constant dense<0.000000e+00> : vector<8xf32>
    %2 = vector.multi_reduction <add>, %1, %cst [1] : vector<8x32xf32> to vector<8xf32>
    %3 = vector.shape_cast %2 : vector<8xf32> to vector<8x1xf32>
    %cst_1 = arith.constant 3.200000e+01 : f32
    %4 = vector.broadcast %cst_1 : f32 to vector<8x1xf32>
    %5 = arith.divf %3, %4 : vector<8x1xf32>
    %cst_2 = arith.constant 9.99999997E-7 : f32
    %6 = vector.broadcast %cst_2 : f32 to vector<8x1xf32>
    %7 = arith.addf %5, %6 : vector<8x1xf32>
    %8 = math.rsqrt %7 : vector<8x1xf32>
    %9 = vector.broadcast %8 : vector<8x1xf32> to vector<8x32xf32>
    %10 = arith.mulf %0, %9 : vector<8x32xf32>
    %c0_3 = arith.constant 0 : index
    %c0_4 = arith.constant 0 : index
    %11 = vector.load %arg7[%c0_3, %c0_4] : memref<1x32xf32, #tpu.memory_space<vmem>>, vector<1x32xf32>
    %12 = vector.broadcast %11 : vector<1x32xf32> to vector<8x32xf32>
    %13 = arith.mulf %10, %12 : vector<8x32xf32>
    %14 = arith.truncf %13 : vector<8x32xf32> to vector<8x32xbf16>
    %c0_5 = arith.constant 0 : index
    %c0_6 = arith.constant 0 : index
    %15 = vector.load %arg8[%c0_5, %c0_6] : memref<32x96xbf16, #tpu.memory_space<vmem>>, vector<32x96xbf16>
    %cst_7 = arith.constant dense<0.000000e+00> : vector<8x96xf32>
    %16 = tpu.matmul %14, %15, %cst_7 {dimension_numbers = #tpu.dot_dimension_numbers<[1], [0], [0], [1], [0, 0, 1, 1], [], []>} : vector<8x32xbf16>, vector<32x96xbf16>, vector<8x96xf32> -> vector<8x96xf32>
    %c0_8 = arith.constant 0 : index
    %c0_9 = arith.constant 0 : index
    %17 = vector.load %arg9[%c0_8, %c0_9] : memref<1x96xf32, #tpu.memory_space<vmem>>, vector<1x96xf32>
    %18 = vector.broadcast %17 : vector<1x96xf32> to vector<8x96xf32>
    %19 = arith.addf %16, %18 : vector<8x96xf32>
    %c0_10 = arith.constant 0 : index
    %c0_11 = arith.constant 0 : index
    %20 = vector.load %arg3[%c0_10, %c0_11] : memref<8x8xf32, #tpu.memory_space<vmem>>, vector<8x8xf32>
    %c0_12 = arith.constant 0 : index
    %c0_13 = arith.constant 0 : index
    %21 = vector.load %arg4[%c0_12, %c0_13] : memref<8x8xf32, #tpu.memory_space<vmem>>, vector<8x8xf32>
    %22 = vector.extract_strided_slice %19 {offsets = [0, 0], sizes = [8, 32], strides = [1, 1]} : vector<8x96xf32> to vector<8x32xf32>
    %23 = vector.extract_strided_slice %22 {offsets = [0, 0], sizes = [8, 8], strides = [1, 1]} : vector<8x32xf32> to vector<8x8xf32>
    %24 = vector.extract_strided_slice %23 {offsets = [0, 0], sizes = [8, 4], strides = [1, 1]} : vector<8x8xf32> to vector<8x4xf32>
    %25 = vector.extract_strided_slice %23 {offsets = [0, 4], sizes = [8, 4], strides = [1, 1]} : vector<8x8xf32> to vector<8x4xf32>
    %cst_14 = arith.constant 0.000000e+00 : f32
    %26 = vector.broadcast %cst_14 : f32 to vector<8x4xf32>
    %27 = arith.subf %26, %25 : vector<8x4xf32>
    %28 = tpu.concatenate %27, %24 in 1 : vector<8x4xf32>, vector<8x4xf32> -> vector<8x8xf32>
    %29 = arith.mulf %23, %20 : vector<8x8xf32>
    %30 = arith.mulf %28, %21 : vector<8x8xf32>
    %31 = arith.addf %29, %30 : vector<8x8xf32>
    %32 = vector.extract_strided_slice %22 {offsets = [0, 8], sizes = [8, 8], strides = [1, 1]} : vector<8x32xf32> to vector<8x8xf32>
    %33 = vector.extract_strided_slice %32 {offsets = [0, 0], sizes = [8, 4], strides = [1, 1]} : vector<8x8xf32> to vector<8x4xf32>
    %34 = vector.extract_strided_slice %32 {offsets = [0, 4], sizes = [8, 4], strides = [1, 1]} : vector<8x8xf32> to vector<8x4xf32>
    %cst_15 = arith.constant 0.000000e+00 : f32
    %35 = vector.broadcast %cst_15 : f32 to vector<8x4xf32>
    %36 = arith.subf %35, %34 : vector<8x4xf32>
    %37 = tpu.concatenate %36, %33 in 1 : vector<8x4xf32>, vector<8x4xf32> -> vector<8x8xf32>
    %38 = arith.mulf %32, %20 : vector<8x8xf32>
    %39 = arith.mulf %37, %21 : vector<8x8xf32>
    %40 = arith.addf %38, %39 : vector<8x8xf32>
    %41 = vector.extract_strided_slice %22 {offsets = [0, 16], sizes = [8, 8], strides = [1, 1]} : vector<8x32xf32> to vector<8x8xf32>
    %42 = vector.extract_strided_slice %41 {offsets = [0, 0], sizes = [8, 4], strides = [1, 1]} : vector<8x8xf32> to vector<8x4xf32>
    %43 = vector.extract_strided_slice %41 {offsets = [0, 4], sizes = [8, 4], strides = [1, 1]} : vector<8x8xf32> to vector<8x4xf32>
    %cst_16 = arith.constant 0.000000e+00 : f32
    %44 = vector.broadcast %cst_16 : f32 to vector<8x4xf32>
    %45 = arith.subf %44, %43 : vector<8x4xf32>
    %46 = tpu.concatenate %45, %42 in 1 : vector<8x4xf32>, vector<8x4xf32> -> vector<8x8xf32>
    %47 = arith.mulf %41, %20 : vector<8x8xf32>
    %48 = arith.mulf %46, %21 : vector<8x8xf32>
    %49 = arith.addf %47, %48 : vector<8x8xf32>
    %50 = vector.extract_strided_slice %22 {offsets = [0, 24], sizes = [8, 8], strides = [1, 1]} : vector<8x32xf32> to vector<8x8xf32>
    %51 = vector.extract_strided_slice %50 {offsets = [0, 0], sizes = [8, 4], strides = [1, 1]} : vector<8x8xf32> to vector<8x4xf32>
    %52 = vector.extract_strided_slice %50 {offsets = [0, 4], sizes = [8, 4], strides = [1, 1]} : vector<8x8xf32> to vector<8x4xf32>
    %cst_17 = arith.constant 0.000000e+00 : f32
    %53 = vector.broadcast %cst_17 : f32 to vector<8x4xf32>
    %54 = arith.subf %53, %52 : vector<8x4xf32>
    %55 = tpu.concatenate %54, %51 in 1 : vector<8x4xf32>, vector<8x4xf32> -> vector<8x8xf32>
    %56 = arith.mulf %50, %20 : vector<8x8xf32>
    %57 = arith.mulf %55, %21 : vector<8x8xf32>
    %58 = arith.addf %56, %57 : vector<8x8xf32>
    %59 = tpu.concatenate %31, %40, %49, %58 in 1 : vector<8x8xf32>, vector<8x8xf32>, vector<8x8xf32>, vector<8x8xf32> -> vector<8x32xf32>
    %60 = vector.extract_strided_slice %19 {offsets = [0, 32], sizes = [8, 32], strides = [1, 1]} : vector<8x96xf32> to vector<8x32xf32>
    %61 = vector.extract_strided_slice %60 {offsets = [0, 0], sizes = [8, 8], strides = [1, 1]} : vector<8x32xf32> to vector<8x8xf32>
    %62 = vector.extract_strided_slice %61 {offsets = [0, 0], sizes = [8, 4], strides = [1, 1]} : vector<8x8xf32> to vector<8x4xf32>
    %63 = vector.extract_strided_slice %61 {offsets = [0, 4], sizes = [8, 4], strides = [1, 1]} : vector<8x8xf32> to vector<8x4xf32>
    %cst_18 = arith.constant 0.000000e+00 : f32
    %64 = vector.broadcast %cst_18 : f32 to vector<8x4xf32>
    %65 = arith.subf %64, %63 : vector<8x4xf32>
    %66 = tpu.concatenate %65, %62 in 1 : vector<8x4xf32>, vector<8x4xf32> -> vector<8x8xf32>
    %67 = arith.mulf %61, %20 : vector<8x8xf32>
    %68 = arith.mulf %66, %21 : vector<8x8xf32>
    %69 = arith.addf %67, %68 : vector<8x8xf32>
    %70 = vector.extract_strided_slice %60 {offsets = [0, 8], sizes = [8, 8], strides = [1, 1]} : vector<8x32xf32> to vector<8x8xf32>
    %71 = vector.extract_strided_slice %70 {offsets = [0, 0], sizes = [8, 4], strides = [1, 1]} : vector<8x8xf32> to vector<8x4xf32>
    %72 = vector.extract_strided_slice %70 {offsets = [0, 4], sizes = [8, 4], strides = [1, 1]} : vector<8x8xf32> to vector<8x4xf32>
    %cst_19 = arith.constant 0.000000e+00 : f32
    %73 = vector.broadcast %cst_19 : f32 to vector<8x4xf32>
    %74 = arith.subf %73, %72 : vector<8x4xf32>
    %75 = tpu.concatenate %74, %71 in 1 : vector<8x4xf32>, vector<8x4xf32> -> vector<8x8xf32>
    %76 = arith.mulf %70, %20 : vector<8x8xf32>
    %77 = arith.mulf %75, %21 : vector<8x8xf32>
    %78 = arith.addf %76, %77 : vector<8x8xf32>
    %79 = vector.extract_strided_slice %60 {offsets = [0, 16], sizes = [8, 8], strides = [1, 1]} : vector<8x32xf32> to vector<8x8xf32>
    %80 = vector.extract_strided_slice %79 {offsets = [0, 0], sizes = [8, 4], strides = [1, 1]} : vector<8x8xf32> to vector<8x4xf32>
    %81 = vector.extract_strided_slice %79 {offsets = [0, 4], sizes = [8, 4], strides = [1, 1]} : vector<8x8xf32> to vector<8x4xf32>
    %cst_20 = arith.constant 0.000000e+00 : f32
    %82 = vector.broadcast %cst_20 : f32 to vector<8x4xf32>
    %83 = arith.subf %82, %81 : vector<8x4xf32>
    %84 = tpu.concatenate %83, %80 in 1 : vector<8x4xf32>, vector<8x4xf32> -> vector<8x8xf32>
    %85 = arith.mulf %79, %20 : vector<8x8xf32>
    %86 = arith.mulf %84, %21 : vector<8x8xf32>
    %87 = arith.addf %85, %86 : vector<8x8xf32>
    %88 = vector.extract_strided_slice %60 {offsets = [0, 24], sizes = [8, 8], strides = [1, 1]} : vector<8x32xf32> to vector<8x8xf32>
    %89 = vector.extract_strided_slice %88 {offsets = [0, 0], sizes = [8, 4], strides = [1, 1]} : vector<8x8xf32> to vector<8x4xf32>
    %90 = vector.extract_strided_slice %88 {offsets = [0, 4], sizes = [8, 4], strides = [1, 1]} : vector<8x8xf32> to vector<8x4xf32>
    %cst_21 = arith.constant 0.000000e+00 : f32
    %91 = vector.broadcast %cst_21 : f32 to vector<8x4xf32>
    %92 = arith.subf %91, %90 : vector<8x4xf32>
    %93 = tpu.concatenate %92, %89 in 1 : vector<8x4xf32>, vector<8x4xf32> -> vector<8x8xf32>
    %94 = arith.mulf %88, %20 : vector<8x8xf32>
    %95 = arith.mulf %93, %21 : vector<8x8xf32>
    %96 = arith.addf %94, %95 : vector<8x8xf32>
    %97 = tpu.concatenate %69, %78, %87, %96 in 1 : vector<8x8xf32>, vector<8x8xf32>, vector<8x8xf32>, vector<8x8xf32> -> vector<8x32xf32>
    %98 = vector.extract_strided_slice %19 {offsets = [0, 64], sizes = [8, 32], strides = [1, 1]} : vector<8x96xf32> to vector<8x32xf32>
    %99 = tpu.iota {dimensions = array<i32: 1>} : vector<8x16xi32>
    %100 = tpu.iota {dimensions = array<i32: 0>} : vector<8x16xi32>
    %c8_i32 = arith.constant 8 : i32
    %101 = vector.broadcast %c8_i32 : i32 to vector<8x16xi32>
    %102 = arith.addi %100, %101 : vector<8x16xi32>
    %103 = arith.cmpi sle, %99, %102 : vector<8x16xi32>
    %c0_22 = arith.constant 0 : index
    %c0_23 = arith.constant 0 : index
    %c0_24 = arith.constant 0 : index
    %104 = vector.load %arg2[%c0_22, %c0_23, %c0_24] : memref<1x1x16xf32, #tpu.memory_space<vmem>>, vector<1x1x16xf32>
    %105 = vector.shape_cast %104 : vector<1x1x16xf32> to vector<1x16xf32>
    %cst_25 = arith.constant 5.000000e-01 : f32
    %106 = vector.broadcast %cst_25 : f32 to vector<1x16xf32>
    %107 = arith.cmpf ogt, %105, %106 : vector<1x16xf32>
    %108 = vector.broadcast %107 : vector<1x16xi1> to vector<8x16xi1>
    %109 = arith.andi %103, %108 : vector<8x16xi1>
    %cst_26 = arith.constant 0.000000e+00 : f32
    %cst_27 = arith.constant -1.000000e+09 : f32
    %110 = vector.broadcast %cst_26 : f32 to vector<8x16xf32>
    %111 = vector.broadcast %cst_27 : f32 to vector<8x16xf32>
    %112 = arith.select %109, %110, %111 : vector<8x16xi1>, vector<8x16xf32>
    %113 = vector.extract_strided_slice %59 {offsets = [0, 0], sizes = [8, 8], strides = [1, 1]} : vector<8x32xf32> to vector<8x8xf32>
    %114 = vector.extract_strided_slice %97 {offsets = [0, 0], sizes = [8, 8], strides = [1, 1]} : vector<8x32xf32> to vector<8x8xf32>
    %115 = vector.extract_strided_slice %98 {offsets = [0, 0], sizes = [8, 8], strides = [1, 1]} : vector<8x32xf32> to vector<8x8xf32>
    %c0_28 = arith.constant 0 : index
    %c0_29 = arith.constant 0 : index
    %c0_30 = arith.constant 0 : index
    %c0_31 = arith.constant 0 : index
    %116 = vector.load %arg5[%c0_28, %c0_29, %c0_30, %c0_31] : memref<1x4x8x8xf32, #tpu.memory_space<vmem>>, vector<1x1x8x8xf32>
    %117 = vector.shape_cast %116 : vector<1x1x8x8xf32> to vector<8x8xf32>
    %118 = tpu.concatenate %117, %114 in 0 : vector<8x8xf32>, vector<8x8xf32> -> vector<16x8xf32>
    %c0_32 = arith.constant 0 : index
    %c0_33 = arith.constant 0 : index
    %c0_34 = arith.constant 0 : index
    %c0_35 = arith.constant 0 : index
    %119 = vector.load %arg6[%c0_32, %c0_33, %c0_34, %c0_35] : memref<1x4x8x8xf32, #tpu.memory_space<vmem>>, vector<1x1x8x8xf32>
    %120 = vector.shape_cast %119 : vector<1x1x8x8xf32> to vector<8x8xf32>
    %121 = tpu.concatenate %120, %115 in 0 : vector<8x8xf32>, vector<8x8xf32> -> vector<16x8xf32>
    %c0_36 = arith.constant 0 : index
    %c0_37 = arith.constant 0 : index
    %c0_38 = arith.constant 0 : index
    %c0_39 = arith.constant 0 : index
    %122 = vector.load %arg16[%c0_36, %c0_37, %c0_38, %c0_39] : memref<1x4x16x8xf32, #tpu.memory_space<vmem>>, vector<1x1x16x8xf32>
    %123 = vector.shape_cast %122 : vector<1x1x16x8xf32> to vector<16x8xf32>
    %124 = vector.shape_cast %118 : vector<16x8xf32> to vector<1x1x16x8xf32>
    tpu.vector_store %arg16[%c0_36, %c0_37, %c0_38, %c0_39], %124 {strides = array<i32>} : memref<1x4x16x8xf32, #tpu.memory_space<vmem>>, vector<1x1x16x8xf32>,
    %c0_40 = arith.constant 0 : index
    %c0_41 = arith.constant 0 : index
    %c0_42 = arith.constant 0 : index
    %c0_43 = arith.constant 0 : index
    %125 = vector.load %arg17[%c0_40, %c0_41, %c0_42, %c0_43] : memref<1x4x16x8xf32, #tpu.memory_space<vmem>>, vector<1x1x16x8xf32>
    %126 = vector.shape_cast %125 : vector<1x1x16x8xf32> to vector<16x8xf32>
    %127 = vector.shape_cast %121 : vector<16x8xf32> to vector<1x1x16x8xf32>
    tpu.vector_store %arg17[%c0_40, %c0_41, %c0_42, %c0_43], %127 {strides = array<i32>} : memref<1x4x16x8xf32, #tpu.memory_space<vmem>>, vector<1x1x16x8xf32>,
    %128 = arith.truncf %113 : vector<8x8xf32> to vector<8x8xbf16>
    %129 = arith.truncf %118 : vector<16x8xf32> to vector<16x8xbf16>
    %cst_44 = arith.constant dense<0.000000e+00> : vector<8x16xf32>
    %130 = tpu.matmul %128, %129, %cst_44 {dimension_numbers = #tpu.dot_dimension_numbers<[1], [1], [0], [0], [0, 0, 1, 0], [], []>} : vector<8x8xbf16>, vector<16x8xbf16>, vector<8x16xf32> -> vector<8x16xf32>
    %cst_45 = arith.constant 0.353553385 : f32
    %131 = vector.broadcast %cst_45 : f32 to vector<8x16xf32>
    %132 = arith.mulf %130, %131 : vector<8x16xf32>
    %133 = arith.addf %132, %112 : vector<8x16xf32>
    %cst_46 = arith.constant dense<0xFF800000> : vector<8xf32>
    %134 = vector.multi_reduction <maximumf>, %133, %cst_46 [1] : vector<8x16xf32> to vector<8xf32>
    %135 = vector.shape_cast %134 : vector<8xf32> to vector<8x1xf32>
    %136 = vector.broadcast %135 : vector<8x1xf32> to vector<8x16xf32>
    %137 = arith.subf %133, %136 : vector<8x16xf32>
    %138 = math.exp %137 : vector<8x16xf32>
    %cst_47 = arith.constant dense<0.000000e+00> : vector<8xf32>
    %139 = vector.multi_reduction <add>, %138, %cst_47 [1] : vector<8x16xf32> to vector<8xf32>
    %140 = vector.shape_cast %139 : vector<8xf32> to vector<8x1xf32>
    %141 = tpu.reciprocal %140 {approx = true} : vector<8x1xf32> -> vector<8x1xf32>
    %142 = vector.broadcast %141 : vector<8x1xf32> to vector<8x16xf32>
    %143 = arith.mulf %138, %142 : vector<8x16xf32>
    %144 = arith.truncf %143 : vector<8x16xf32> to vector<8x16xbf16>
    %145 = arith.truncf %121 : vector<16x8xf32> to vector<16x8xbf16>
    %cst_48 = arith.constant dense<0.000000e+00> : vector<8x8xf32>
    %146 = tpu.matmul %144, %145, %cst_48 {dimension_numbers = #tpu.dot_dimension_numbers<[1], [0], [0], [1], [0, 0, 1, 1], [], []>} : vector<8x16xbf16>, vector<16x8xbf16>, vector<8x8xf32> -> vector<8x8xf32>
    %147 = vector.extract_strided_slice %59 {offsets = [0, 8], sizes = [8, 8], strides = [1, 1]} : vector<8x32xf32> to vector<8x8xf32>
    %148 = vector.extract_strided_slice %97 {offsets = [0, 8], sizes = [8, 8], strides = [1, 1]} : vector<8x32xf32> to vector<8x8xf32>
    %149 = vector.extract_strided_slice %98 {offsets = [0, 8], sizes = [8, 8], strides = [1, 1]} : vector<8x32xf32> to vector<8x8xf32>
    %c0_49 = arith.constant 0 : index
    %c1 = arith.constant 1 : index
    %c0_50 = arith.constant 0 : index
    %c0_51 = arith.constant 0 : index
    %150 = vector.load %arg5[%c0_49, %c1, %c0_50, %c0_51] : memref<1x4x8x8xf32, #tpu.memory_space<vmem>>, vector<1x1x8x8xf32>
    %151 = vector.shape_cast %150 : vector<1x1x8x8xf32> to vector<8x8xf32>
    %152 = tpu.concatenate %151, %148 in 0 : vector<8x8xf32>, vector<8x8xf32> -> vector<16x8xf32>
    %c0_52 = arith.constant 0 : index
    %c1_53 = arith.constant 1 : index
    %c0_54 = arith.constant 0 : index
    %c0_55 = arith.constant 0 : index
    %153 = vector.load %arg6[%c0_52, %c1_53, %c0_54, %c0_55] : memref<1x4x8x8xf32, #tpu.memory_space<vmem>>, vector<1x1x8x8xf32>
    %154 = vector.shape_cast %153 : vector<1x1x8x8xf32> to vector<8x8xf32>
    %155 = tpu.concatenate %154, %149 in 0 : vector<8x8xf32>, vector<8x8xf32> -> vector<16x8xf32>
    %c0_56 = arith.constant 0 : index
    %c1_57 = arith.constant 1 : index
    %c0_58 = arith.constant 0 : index
    %c0_59 = arith.constant 0 : index
    %156 = vector.load %arg16[%c0_56, %c1_57, %c0_58, %c0_59] : memref<1x4x16x8xf32, #tpu.memory_space<vmem>>, vector<1x1x16x8xf32>
    %157 = vector.shape_cast %156 : vector<1x1x16x8xf32> to vector<16x8xf32>
    %158 = vector.shape_cast %152 : vector<16x8xf32> to vector<1x1x16x8xf32>
    tpu.vector_store %arg16[%c0_56, %c1_57, %c0_58, %c0_59], %158 {strides = array<i32>} : memref<1x4x16x8xf32, #tpu.memory_space<vmem>>, vector<1x1x16x8xf32>,
    %c0_60 = arith.constant 0 : index
    %c1_61 = arith.constant 1 : index
    %c0_62 = arith.constant 0 : index
    %c0_63 = arith.constant 0 : index
    %159 = vector.load %arg17[%c0_60, %c1_61, %c0_62, %c0_63] : memref<1x4x16x8xf32, #tpu.memory_space<vmem>>, vector<1x1x16x8xf32>
    %160 = vector.shape_cast %159 : vector<1x1x16x8xf32> to vector<16x8xf32>
    %161 = vector.shape_cast %155 : vector<16x8xf32> to vector<1x1x16x8xf32>
    tpu.vector_store %arg17[%c0_60, %c1_61, %c0_62, %c0_63], %161 {strides = array<i32>} : memref<1x4x16x8xf32, #tpu.memory_space<vmem>>, vector<1x1x16x8xf32>,
    %162 = arith.truncf %147 : vector<8x8xf32> to vector<8x8xbf16>
    %163 = arith.truncf %152 : vector<16x8xf32> to vector<16x8xbf16>
    %cst_64 = arith.constant dense<0.000000e+00> : vector<8x16xf32>
    %164 = tpu.matmul %162, %163, %cst_64 {dimension_numbers = #tpu.dot_dimension_numbers<[1], [1], [0], [0], [0, 0, 1, 0], [], []>} : vector<8x8xbf16>, vector<16x8xbf16>, vector<8x16xf32> -> vector<8x16xf32>
    %cst_65 = arith.constant 0.353553385 : f32
    %165 = vector.broadcast %cst_65 : f32 to vector<8x16xf32>
    %166 = arith.mulf %164, %165 : vector<8x16xf32>
    %167 = arith.addf %166, %112 : vector<8x16xf32>
    %cst_66 = arith.constant dense<0xFF800000> : vector<8xf32>
    %168 = vector.multi_reduction <maximumf>, %167, %cst_66 [1] : vector<8x16xf32> to vector<8xf32>
    %169 = vector.shape_cast %168 : vector<8xf32> to vector<8x1xf32>
    %170 = vector.broadcast %169 : vector<8x1xf32> to vector<8x16xf32>
    %171 = arith.subf %167, %170 : vector<8x16xf32>
    %172 = math.exp %171 : vector<8x16xf32>
    %cst_67 = arith.constant dense<0.000000e+00> : vector<8xf32>
    %173 = vector.multi_reduction <add>, %172, %cst_67 [1] : vector<8x16xf32> to vector<8xf32>
    %174 = vector.shape_cast %173 : vector<8xf32> to vector<8x1xf32>
    %175 = tpu.reciprocal %174 {approx = true} : vector<8x1xf32> -> vector<8x1xf32>
    %176 = vector.broadcast %175 : vector<8x1xf32> to vector<8x16xf32>
    %177 = arith.mulf %172, %176 : vector<8x16xf32>
    %178 = arith.truncf %177 : vector<8x16xf32> to vector<8x16xbf16>
    %179 = arith.truncf %155 : vector<16x8xf32> to vector<16x8xbf16>
    %cst_68 = arith.constant dense<0.000000e+00> : vector<8x8xf32>
    %180 = tpu.matmul %178, %179, %cst_68 {dimension_numbers = #tpu.dot_dimension_numbers<[1], [0], [0], [1], [0, 0, 1, 1], [], []>} : vector<8x16xbf16>, vector<16x8xbf16>, vector<8x8xf32> -> vector<8x8xf32>
    %181 = vector.extract_strided_slice %59 {offsets = [0, 16], sizes = [8, 8], strides = [1, 1]} : vector<8x32xf32> to vector<8x8xf32>
    %182 = vector.extract_strided_slice %97 {offsets = [0, 16], sizes = [8, 8], strides = [1, 1]} : vector<8x32xf32> to vector<8x8xf32>
    %183 = vector.extract_strided_slice %98 {offsets = [0, 16], sizes = [8, 8], strides = [1, 1]} : vector<8x32xf32> to vector<8x8xf32>
    %c0_69 = arith.constant 0 : index
    %c2 = arith.constant 2 : index
    %c0_70 = arith.constant 0 : index
    %c0_71 = arith.constant 0 : index
    %184 = vector.load %arg5[%c0_69, %c2, %c0_70, %c0_71] : memref<1x4x8x8xf32, #tpu.memory_space<vmem>>, vector<1x1x8x8xf32>
    %185 = vector.shape_cast %184 : vector<1x1x8x8xf32> to vector<8x8xf32>
    %186 = tpu.concatenate %185, %182 in 0 : vector<8x8xf32>, vector<8x8xf32> -> vector<16x8xf32>
    %c0_72 = arith.constant 0 : index
    %c2_73 = arith.constant 2 : index
    %c0_74 = arith.constant 0 : index
    %c0_75 = arith.constant 0 : index
    %187 = vector.load %arg6[%c0_72, %c2_73, %c0_74, %c0_75] : memref<1x4x8x8xf32, #tpu.memory_space<vmem>>, vector<1x1x8x8xf32>
    %188 = vector.shape_cast %187 : vector<1x1x8x8xf32> to vector<8x8xf32>
    %189 = tpu.concatenate %188, %183 in 0 : vector<8x8xf32>, vector<8x8xf32> -> vector<16x8xf32>
    %c0_76 = arith.constant 0 : index
    %c2_77 = arith.constant 2 : index
    %c0_78 = arith.constant 0 : index
    %c0_79 = arith.constant 0 : index
    %190 = vector.load %arg16[%c0_76, %c2_77, %c0_78, %c0_79] : memref<1x4x16x8xf32, #tpu.memory_space<vmem>>, vector<1x1x16x8xf32>
    %191 = vector.shape_cast %190 : vector<1x1x16x8xf32> to vector<16x8xf32>
    %192 = vector.shape_cast %186 : vector<16x8xf32> to vector<1x1x16x8xf32>
    tpu.vector_store %arg16[%c0_76, %c2_77, %c0_78, %c0_79], %192 {strides = array<i32>} : memref<1x4x16x8xf32, #tpu.memory_space<vmem>>, vector<1x1x16x8xf32>,
    %c0_80 = arith.constant 0 : index
    %c2_81 = arith.constant 2 : index
    %c0_82 = arith.constant 0 : index
    %c0_83 = arith.constant 0 : index
    %193 = vector.load %arg17[%c0_80, %c2_81, %c0_82, %c0_83] : memref<1x4x16x8xf32, #tpu.memory_space<vmem>>, vector<1x1x16x8xf32>
    %194 = vector.shape_cast %193 : vector<1x1x16x8xf32> to vector<16x8xf32>
    %195 = vector.shape_cast %189 : vector<16x8xf32> to vector<1x1x16x8xf32>
    tpu.vector_store %arg17[%c0_80, %c2_81, %c0_82, %c0_83], %195 {strides = array<i32>} : memref<1x4x16x8xf32, #tpu.memory_space<vmem>>, vector<1x1x16x8xf32>,
    %196 = arith.truncf %181 : vector<8x8xf32> to vector<8x8xbf16>
    %197 = arith.truncf %186 : vector<16x8xf32> to vector<16x8xbf16>
    %cst_84 = arith.constant dense<0.000000e+00> : vector<8x16xf32>
    %198 = tpu.matmul %196, %197, %cst_84 {dimension_numbers = #tpu.dot_dimension_numbers<[1], [1], [0], [0], [0, 0, 1, 0], [], []>} : vector<8x8xbf16>, vector<16x8xbf16>, vector<8x16xf32> -> vector<8x16xf32>
    %cst_85 = arith.constant 0.353553385 : f32
    %199 = vector.broadcast %cst_85 : f32 to vector<8x16xf32>
    %200 = arith.mulf %198, %199 : vector<8x16xf32>
    %201 = arith.addf %200, %112 : vector<8x16xf32>
    %cst_86 = arith.constant dense<0xFF800000> : vector<8xf32>
    %202 = vector.multi_reduction <maximumf>, %201, %cst_86 [1] : vector<8x16xf32> to vector<8xf32>
    %203 = vector.shape_cast %202 : vector<8xf32> to vector<8x1xf32>
    %204 = vector.broadcast %203 : vector<8x1xf32> to vector<8x16xf32>
    %205 = arith.subf %201, %204 : vector<8x16xf32>
    %206 = math.exp %205 : vector<8x16xf32>
    %cst_87 = arith.constant dense<0.000000e+00> : vector<8xf32>
    %207 = vector.multi_reduction <add>, %206, %cst_87 [1] : vector<8x16xf32> to vector<8xf32>
    %208 = vector.shape_cast %207 : vector<8xf32> to vector<8x1xf32>
    %209 = tpu.reciprocal %208 {approx = true} : vector<8x1xf32> -> vector<8x1xf32>
    %210 = vector.broadcast %209 : vector<8x1xf32> to vector<8x16xf32>
    %211 = arith.mulf %206, %210 : vector<8x16xf32>
    %212 = arith.truncf %211 : vector<8x16xf32> to vector<8x16xbf16>
    %213 = arith.truncf %189 : vector<16x8xf32> to vector<16x8xbf16>
    %cst_88 = arith.constant dense<0.000000e+00> : vector<8x8xf32>
    %214 = tpu.matmul %212, %213, %cst_88 {dimension_numbers = #tpu.dot_dimension_numbers<[1], [0], [0], [1], [0, 0, 1, 1], [], []>} : vector<8x16xbf16>, vector<16x8xbf16>, vector<8x8xf32> -> vector<8x8xf32>
    %215 = vector.extract_strided_slice %59 {offsets = [0, 24], sizes = [8, 8], strides = [1, 1]} : vector<8x32xf32> to vector<8x8xf32>
    %216 = vector.extract_strided_slice %97 {offsets = [0, 24], sizes = [8, 8], strides = [1, 1]} : vector<8x32xf32> to vector<8x8xf32>
    %217 = vector.extract_strided_slice %98 {offsets = [0, 24], sizes = [8, 8], strides = [1, 1]} : vector<8x32xf32> to vector<8x8xf32>
    %c0_89 = arith.constant 0 : index
    %c3 = arith.constant 3 : index
    %c0_90 = arith.constant 0 : index
    %c0_91 = arith.constant 0 : index
    %218 = vector.load %arg5[%c0_89, %c3, %c0_90, %c0_91] : memref<1x4x8x8xf32, #tpu.memory_space<vmem>>, vector<1x1x8x8xf32>
    %219 = vector.shape_cast %218 : vector<1x1x8x8xf32> to vector<8x8xf32>
    %220 = tpu.concatenate %219, %216 in 0 : vector<8x8xf32>, vector<8x8xf32> -> vector<16x8xf32>
    %c0_92 = arith.constant 0 : index
    %c3_93 = arith.constant 3 : index
    %c0_94 = arith.constant 0 : index
    %c0_95 = arith.constant 0 : index
    %221 = vector.load %arg6[%c0_92, %c3_93, %c0_94, %c0_95] : memref<1x4x8x8xf32, #tpu.memory_space<vmem>>, vector<1x1x8x8xf32>
    %222 = vector.shape_cast %221 : vector<1x1x8x8xf32> to vector<8x8xf32>
    %223 = tpu.concatenate %222, %217 in 0 : vector<8x8xf32>, vector<8x8xf32> -> vector<16x8xf32>
    %c0_96 = arith.constant 0 : index
    %c3_97 = arith.constant 3 : index
    %c0_98 = arith.constant 0 : index
    %c0_99 = arith.constant 0 : index
    %224 = vector.load %arg16[%c0_96, %c3_97, %c0_98, %c0_99] : memref<1x4x16x8xf32, #tpu.memory_space<vmem>>, vector<1x1x16x8xf32>
    %225 = vector.shape_cast %224 : vector<1x1x16x8xf32> to vector<16x8xf32>
    %226 = vector.shape_cast %220 : vector<16x8xf32> to vector<1x1x16x8xf32>
    tpu.vector_store %arg16[%c0_96, %c3_97, %c0_98, %c0_99], %226 {strides = array<i32>} : memref<1x4x16x8xf32, #tpu.memory_space<vmem>>, vector<1x1x16x8xf32>,
    %c0_100 = arith.constant 0 : index
    %c3_101 = arith.constant 3 : index
    %c0_102 = arith.constant 0 : index
    %c0_103 = arith.constant 0 : index
    %227 = vector.load %arg17[%c0_100, %c3_101, %c0_102, %c0_103] : memref<1x4x16x8xf32, #tpu.memory_space<vmem>>, vector<1x1x16x8xf32>
    %228 = vector.shape_cast %227 : vector<1x1x16x8xf32> to vector<16x8xf32>
    %229 = vector.shape_cast %223 : vector<16x8xf32> to vector<1x1x16x8xf32>
    tpu.vector_store %arg17[%c0_100, %c3_101, %c0_102, %c0_103], %229 {strides = array<i32>} : memref<1x4x16x8xf32, #tpu.memory_space<vmem>>, vector<1x1x16x8xf32>,
    %230 = arith.truncf %215 : vector<8x8xf32> to vector<8x8xbf16>
    %231 = arith.truncf %220 : vector<16x8xf32> to vector<16x8xbf16>
    %cst_104 = arith.constant dense<0.000000e+00> : vector<8x16xf32>
    %232 = tpu.matmul %230, %231, %cst_104 {dimension_numbers = #tpu.dot_dimension_numbers<[1], [1], [0], [0], [0, 0, 1, 0], [], []>} : vector<8x8xbf16>, vector<16x8xbf16>, vector<8x16xf32> -> vector<8x16xf32>
    %cst_105 = arith.constant 0.353553385 : f32
    %233 = vector.broadcast %cst_105 : f32 to vector<8x16xf32>
    %234 = arith.mulf %232, %233 : vector<8x16xf32>
    %235 = arith.addf %234, %112 : vector<8x16xf32>
    %cst_106 = arith.constant dense<0xFF800000> : vector<8xf32>
    %236 = vector.multi_reduction <maximumf>, %235, %cst_106 [1] : vector<8x16xf32> to vector<8xf32>
    %237 = vector.shape_cast %236 : vector<8xf32> to vector<8x1xf32>
    %238 = vector.broadcast %237 : vector<8x1xf32> to vector<8x16xf32>
    %239 = arith.subf %235, %238 : vector<8x16xf32>
    %240 = math.exp %239 : vector<8x16xf32>
    %cst_107 = arith.constant dense<0.000000e+00> : vector<8xf32>
    %241 = vector.multi_reduction <add>, %240, %cst_107 [1] : vector<8x16xf32> to vector<8xf32>
    %242 = vector.shape_cast %241 : vector<8xf32> to vector<8x1xf32>
    %243 = tpu.reciprocal %242 {approx = true} : vector<8x1xf32> -> vector<8x1xf32>
    %244 = vector.broadcast %243 : vector<8x1xf32> to vector<8x16xf32>
    %245 = arith.mulf %240, %244 : vector<8x16xf32>
    %246 = arith.truncf %245 : vector<8x16xf32> to vector<8x16xbf16>
    %247 = arith.truncf %223 : vector<16x8xf32> to vector<16x8xbf16>
    %cst_108 = arith.constant dense<0.000000e+00> : vector<8x8xf32>
    %248 = tpu.matmul %246, %247, %cst_108 {dimension_numbers = #tpu.dot_dimension_numbers<[1], [0], [0], [1], [0, 0, 1, 1], [], []>} : vector<8x16xbf16>, vector<16x8xbf16>, vector<8x8xf32> -> vector<8x8xf32>
    %249 = tpu.concatenate %146, %180, %214, %248 in 1 : vector<8x8xf32>, vector<8x8xf32>, vector<8x8xf32>, vector<8x8xf32> -> vector<8x32xf32>
    %250 = arith.truncf %249 : vector<8x32xf32> to vector<8x32xbf16>
    %c0_109 = arith.constant 0 : index
    %c0_110 = arith.constant 0 : index
    %251 = vector.load %arg10[%c0_109, %c0_110] : memref<32x32xbf16, #tpu.memory_space<vmem>>, vector<32x32xbf16>
    %cst_111 = arith.constant dense<0.000000e+00> : vector<8x32xf32>
    %252 = tpu.matmul %250, %251, %cst_111 {dimension_numbers = #tpu.dot_dimension_numbers<[1], [0], [0], [1], [0, 0, 1, 1], [], []>} : vector<8x32xbf16>, vector<32x32xbf16>, vector<8x32xf32> -> vector<8x32xf32>
    %253 = arith.addf %0, %252 : vector<8x32xf32>
    %254 = arith.mulf %253, %253 : vector<8x32xf32>
    %cst_112 = arith.constant dense<0.000000e+00> : vector<8xf32>
    %255 = vector.multi_reduction <add>, %254, %cst_112 [1] : vector<8x32xf32> to vector<8xf32>
    %256 = vector.shape_cast %255 : vector<8xf32> to vector<8x1xf32>
    %cst_113 = arith.constant 3.200000e+01 : f32
    %257 = vector.broadcast %cst_113 : f32 to vector<8x1xf32>
    %258 = arith.divf %256, %257 : vector<8x1xf32>
    %cst_114 = arith.constant 9.99999997E-7 : f32
    %259 = vector.broadcast %cst_114 : f32 to vector<8x1xf32>
    %260 = arith.addf %258, %259 : vector<8x1xf32>
    %261 = math.rsqrt %260 : vector<8x1xf32>
    %262 = vector.broadcast %261 : vector<8x1xf32> to vector<8x32xf32>
    %263 = arith.mulf %253, %262 : vector<8x32xf32>
    %c0_115 = arith.constant 0 : index
    %c0_116 = arith.constant 0 : index
    %264 = vector.load %arg11[%c0_115, %c0_116] : memref<1x32xf32, #tpu.memory_space<vmem>>, vector<1x32xf32>
    %265 = vector.broadcast %264 : vector<1x32xf32> to vector<8x32xf32>
    %266 = arith.mulf %263, %265 : vector<8x32xf32>
    %267 = arith.truncf %266 : vector<8x32xf32> to vector<8x32xbf16>
    %c0_117 = arith.constant 0 : index
    %c0_118 = arith.constant 0 : index
    %268 = vector.load %arg12[%c0_117, %c0_118] : memref<32x64xbf16, #tpu.memory_space<vmem>>, vector<32x64xbf16>
    %cst_119 = arith.constant dense<0.000000e+00> : vector<8x64xf32>
    %269 = tpu.matmul %267, %268, %cst_119 {dimension_numbers = #tpu.dot_dimension_numbers<[1], [0], [0], [1], [0, 0, 1, 1], [], []>} : vector<8x32xbf16>, vector<32x64xbf16>, vector<8x64xf32> -> vector<8x64xf32>
    %c0_120 = arith.constant 0 : index
    %c0_121 = arith.constant 0 : index
    %270 = vector.load %arg13[%c0_120, %c0_121] : memref<32x64xbf16, #tpu.memory_space<vmem>>, vector<32x64xbf16>
    %cst_122 = arith.constant dense<0.000000e+00> : vector<8x64xf32>
    %271 = tpu.matmul %267, %270, %cst_122 {dimension_numbers = #tpu.dot_dimension_numbers<[1], [0], [0], [1], [0, 0, 1, 1], [], []>} : vector<8x32xbf16>, vector<32x64xbf16>, vector<8x64xf32> -> vector<8x64xf32>
    %272 = arith.negf %271 : vector<8x64xf32>
    %273 = math.exp %272 : vector<8x64xf32>
    %cst_123 = arith.constant 1.000000e+00 : f32
    %274 = vector.broadcast %cst_123 : f32 to vector<8x64xf32>
    %275 = arith.addf %274, %273 : vector<8x64xf32>
    %276 = arith.divf %274, %275 : vector<8x64xf32>
    %277 = arith.mulf %271, %276 : vector<8x64xf32>
    %278 = arith.mulf %269, %277 : vector<8x64xf32>
    %279 = arith.truncf %278 : vector<8x64xf32> to vector<8x64xbf16>
    %c0_124 = arith.constant 0 : index
    %c0_125 = arith.constant 0 : index
    %280 = vector.load %arg14[%c0_124, %c0_125] : memref<64x32xbf16, #tpu.memory_space<vmem>>, vector<64x32xbf16>
    %cst_126 = arith.constant dense<0.000000e+00> : vector<8x32xf32>
    %281 = tpu.matmul %279, %280, %cst_126 {dimension_numbers = #tpu.dot_dimension_numbers<[1], [0], [0], [1], [0, 0, 1, 1], [], []>} : vector<8x64xbf16>, vector<64x32xbf16>, vector<8x32xf32> -> vector<8x32xf32>
    %282 = arith.addf %253, %281 : vector<8x32xf32>
    %c0_127 = arith.constant 0 : index
    %c0_128 = arith.constant 0 : index
    %283 = vector.load %arg15[%c0_127, %c0_128] : memref<8x32xf32, #tpu.memory_space<vmem>>, vector<8x32xf32>
    tpu.vector_store %arg15[%c0_127, %c0_128], %282 {strides = array<i32>} : memref<8x32xf32, #tpu.memory_space<vmem>>, vector<8x32xf32>,
    return
  }
  func.func @transform_0(%arg0: i32) -> (i32, i32) {
    %c0_i32 = arith.constant 0 : i32
    %c0_i32_0 = arith.constant 0 : i32
    return %arg0, %c0_i32 : i32, i32
  }
  func.func @transform_1(%arg0: i32) -> (i32, i32, i32) {
    %c0_i32 = arith.constant 0 : i32
    %c0_i32_0 = arith.constant 0 : i32
    %c0_i32_1 = arith.constant 0 : i32
    return %arg0, %c0_i32, %c0_i32_0 : i32, i32, i32
  }
  func.func @transform_2(%arg0: i32) -> (i32, i32) {
    %c0_i32 = arith.constant 0 : i32
    %c0_i32_0 = arith.constant 0 : i32
    return %arg0, %c0_i32 : i32, i32
  }
  func.func @transform_3(%arg0: i32) -> (i32, i32) {
    %c0_i32 = arith.constant 0 : i32
    %c0_i32_0 = arith.constant 0 : i32
    return %arg0, %c0_i32 : i32, i32
  }
  func.func @transform_4(%arg0: i32) -> (i32, i32, i32, i32) {
    %c0_i32 = arith.constant 0 : i32
    %c0_i32_0 = arith.constant 0 : i32
    %c0_i32_1 = arith.constant 0 : i32
    %c0_i32_2 = arith.constant 0 : i32
    return %arg0, %c0_i32, %c0_i32_0, %c0_i32_1 : i32, i32, i32, i32
  }
  func.func @transform_5(%arg0: i32) -> (i32, i32, i32, i32) {
    %c0_i32 = arith.constant 0 : i32
    %c0_i32_0 = arith.constant 0 : i32
    %c0_i32_1 = arith.constant 0 : i32
    %c0_i32_2 = arith.constant 0 : i32
    return %arg0, %c0_i32, %c0_i32_0, %c0_i32_1 : i32, i32, i32, i32
  }
  func.func @transform_6(%arg0: i32) -> (i32, i32) {
    %c0_i32 = arith.constant 0 : i32
    %c0_i32_0 = arith.constant 0 : i32
    %c0_i32_1 = arith.constant 0 : i32
    return %c0_i32, %c0_i32_0 : i32, i32
  }
  func.func @transform_7(%arg0: i32) -> (i32, i32) {
    %c0_i32 = arith.constant 0 : i32
    %c0_i32_0 = arith.constant 0 : i32
    %c0_i32_1 = arith.constant 0 : i32
    return %c0_i32, %c0_i32_0 : i32, i32
  }
  func.func @transform_8(%arg0: i32) -> (i32, i32) {
    %c0_i32 = arith.constant 0 : i32
    %c0_i32_0 = arith.constant 0 : i32
    %c0_i32_1 = arith.constant 0 : i32
    return %c0_i32, %c0_i32_0 : i32, i32
  }
  func.func @transform_9(%arg0: i32) -> (i32, i32) {
    %c0_i32 = arith.constant 0 : i32
    %c0_i32_0 = arith.constant 0 : i32
    %c0_i32_1 = arith.constant 0 : i32
    return %c0_i32, %c0_i32_0 : i32, i32
  }
  func.func @transform_10(%arg0: i32) -> (i32, i32) {
    %c0_i32 = arith.constant 0 : i32
    %c0_i32_0 = arith.constant 0 : i32
    %c0_i32_1 = arith.constant 0 : i32
    return %c0_i32, %c0_i32_0 : i32, i32
  }
  func.func @transform_11(%arg0: i32) -> (i32, i32) {
    %c0_i32 = arith.constant 0 : i32
    %c0_i32_0 = arith.constant 0 : i32
    %c0_i32_1 = arith.constant 0 : i32
    return %c0_i32, %c0_i32_0 : i32, i32
  }
  func.func @transform_12(%arg0: i32) -> (i32, i32) {
    %c0_i32 = arith.constant 0 : i32
    %c0_i32_0 = arith.constant 0 : i32
    %c0_i32_1 = arith.constant 0 : i32
    return %c0_i32, %c0_i32_0 : i32, i32
  }
  func.func @transform_13(%arg0: i32) -> (i32, i32) {
    %c0_i32 = arith.constant 0 : i32
    %c0_i32_0 = arith.constant 0 : i32
    %c0_i32_1 = arith.constant 0 : i32
    return %c0_i32, %c0_i32_0 : i32, i32
  }
  func.func @transform_14(%arg0: i32) -> (i32, i32) {
    %c0_i32 = arith.constant 0 : i32
    %c0_i32_0 = arith.constant 0 : i32
    return %arg0, %c0_i32 : i32, i32
  }
  func.func @transform_15(%arg0: i32) -> (i32, i32, i32, i32) {
    %c0_i32 = arith.constant 0 : i32
    %c0_i32_0 = arith.constant 0 : i32
    %c0_i32_1 = arith.constant 0 : i32
    %c0_i32_2 = arith.constant 0 : i32
    return %arg0, %c0_i32, %c0_i32_0, %c0_i32_1 : i32, i32, i32, i32
  }
  func.func @transform_16(%arg0: i32) -> (i32, i32, i32, i32) {
    %c0_i32 = arith.constant 0 : i32
    %c0_i32_0 = arith.constant 0 : i32
    %c0_i32_1 = arith.constant 0 : i32
    %c0_i32_2 = arith.constant 0 : i32
    return %arg0, %c0_i32, %c0_i32_0, %c0_i32_1 : i32, i32, i32, i32
  }
}

</mosaic_0001>

<bundles_post_ra>
// kernel: qwen_forward.5
= control target key start
LH: loop header
LB: loop body
LE: loop exit
PB: predicated region body
PF: predicated region fallthrough
CT: control target
= control target key end

     0   :  { %vm18_vm0 = vcmask 254976   ;;  %s204_s0 = inlined_call_operand.vmem [shape: f32[2,32], index: 0, kind: input, shape index: {}]   ;;  %s205_s1 = inlined_call_operand.vmem [shape: f32[1,32], index: 1, kind: input, shape index: {}]   ;;  %s206_s2 = inlined_call_operand.vmem [shape: bf16[32,128], index: 2, kind: input, shape index: {}]   ;;  %s207_s3 = inlined_call_operand.hbm [shape: f32[2,128], index: 3, kind: output, shape index: {}]  }
   0x1   :  { %v16_v0 = vld [vmem:[%s204_s0] sm:$0x3] }
   0x2   :  { %v17_v1 = vmul.f32 %v16_v0, %v16_v0 }
   0x3   :  { %8 = vsyncpa [#allocation3], 0  ;;  %v129_v3 = vld [vmem:[%s206_s2] sm:$0xff]   ;;  %v157_v4 = vmov 0.0   ;;  %vm158_vm1 = vmmov 0   ;;  %v130_v5 = vld [vmem:[%s206_s2 + $0x8] sm:$0xff]  }
   0x4   :  { %v19_v2 = vsel %vm18_vm0, %v17_v1, 0.0  ;;  %118 = vmatprep.subr.bf16.mxu0 %v157_v4  ;;  %122 = vmatprep.mubr.msk.bf16.mxu0 %vm158_vm1, %v157_v4  ;;  %v111_v10 = vld [vmem:[%s205_s1] ss:$0 sm:$0xff]  ;;  %vm52_vm2 = vcmask 261120   ;;  %s159_s19 = smov [#allocation2]  }
   0x5   :  { %20 = vadd.xlane.f32.xlu0 %v19_v2  ;;  %119 = vmatpush3.bf16.msra.mxu0 %v129_v3  ;;  %s103_s20 = sshll.u32 %s159_s19, 4  ;;  %s104_s20 = int_to_ptr.vmem [resolvable:$true] %s103_s20 }
   0x6   :  { %120 = vmatprep.subr.bf16.mxu0 %v157_v4  ;;  %s133_s2 = scalar_lea.vmem %s104_s20, 32  ;;  %p138_p1 = scmp.lt.s32.totalorder %s104_s20, %s104_s20 }
   0x7   :  { %p134_p0 = scmp.ne.s32.totalorder %s104_s20, %s133_s2  ;;  %p139_p2 = scmp.lt.s32.totalorder %s133_s2, %s133_s2 }
   0x9   :  { %121 = vmatpush3.bf16.msra.mxu0 %v130_v5  ;;  %p140_p3 = por %p139_p2, %p138_p1 }
   0xb   :  { %p141_p4 = pnand %p140_p3, %p134_p0 }
  0x92   :  { %v21_v6 = vpop.xlane.xlu0 %20 }
  0x93   :  { %v23_v7 = vmul.f32 0.03125, %v21_v6 }
  0x95   :  { %v24_v8 = vadd.f32 1e-06, %v23_v7 }
  0x97   :  { %131 = vrsqrt.f32 %v24_v8 }
  0xa1   :  { %v132_v9 = vpop.eup %131 }
  0xa2   :  { %v26_v11 = vmul.f32 %v132_v9, %v16_v0 }
  0xa4   :  { %v34_v12 = vmul.f32 %v111_v10, %v26_v11 }
  0xa6   :  { %v35_v13 = vpack.c.bf16 %v34_v12, %v34_v12 }
  0xa8   :  { %123 = vmatmul.mubr.msk.bf16.vlgmr.msra.gmra.mrb[0].mxu0 %vm52_vm2, %v35_v13 }
 0x17b   :  { %v90_v14 = vpop.f32.mrb[0].mxu0 }
 0x17c   :  { %96 = vst [vmem:[#allocation2] sm:$0x3] %v90_v14  ;;  %v124_v15 = vpop.f32.mrb[1].mxu0 }
 0x17d   :  { %v93_v16 = vpop.f32.mrb[2].mxu0 }
 0x17e   :  { %144 = shalt.err (!%p141_p4)
}
 0x17f   :  { %s145_s22 = scalar_lea.hbm %s207_s3, 32 }
 0x180   :  { %p146_p5 = scmp.ne.s32.totalorder %s207_s3, %s145_s22  ;;  %p149_p6 = scmp.lt.u32.totalorder %s145_s22, %s207_s3 }
 0x182   :  { %p151_p7 = pnand %p149_p6, %p146_p5 }
 0x184   :  { %154 = shalt.err (!%p151_p7)
}
 0x185   :  { %106 = dma.vmem_to_hbm [thread:$0]  %s104_s20, 32, %s207_s3, [#allocation3]   ;;  %v125_v17 = vpop.f32.mrb[3].mxu0 }
 0x186   :  { %155 = dma.done.wait [#allocation3], 32  }
 0x187   :  { %156 = vsyncadd [#allocation3], 4294967264 }
 0x188   :  { %110 = vsyncpa [#allocation3], 1 }

// kernel: qwen_forward.3
= control target key start
LH: loop header
LB: loop body
LE: loop exit
PB: predicated region body
PF: predicated region fallthrough
CT: control target
= control target key end

     0   :  { %s2233_s21 = smov 0   ;;  %s2553_s0 = inlined_call_operand.vmem [shape: f32[16,32], index: 0, kind: input, shape index: {}]   ;;  %s2554_s1 = inlined_call_operand.vmem [shape: f32[2,1,16], index: 1, kind: input, shape index: {}]   ;;  %s2555_s2 = inlined_call_operand.vmem [shape: f32[16,8], index: 2, kind: input, shape index: {}]   ;;  %s2556_s3 = inlined_call_operand.vmem [shape: f32[16,8], index: 3, kind: input, shape index: {}]   ;;  %s2557_s4 = inlined_call_operand.vmem [shape: f32[2,4,8,8], index: 4, kind: input, shape index: {}]   ;;  %s2558_s5 = inlined_call_operand.vmem [shape: f32[2,4,8,8], index: 5, kind: input, shape index: {}]   ;;  %s2559_s6 = inlined_call_operand.vmem [shape: f32[1,32], index: 6, kind: input, shape index: {}]   ;;  %s2560_s7 = inlined_call_operand.vmem [shape: bf16[32,96], index: 7, kind: input, shape index: {}]   ;;  %s2561_s8 = inlined_call_operand.vmem [shape: f32[1,96], index: 8, kind: input, shape index: {}]   ;;  %s2562_s9 = inlined_call_operand.vmem [shape: bf16[32,32], index: 9, kind: input, shape index: {}]   ;;  %s2563_s10 = inlined_call_operand.vmem [shape: f32[1,32], index: 10, kind: input, shape index: {}]   ;;  %s2564_s11 = inlined_call_operand.vmem [shape: bf16[32,64], index: 11, kind: input, shape index: {}]   ;;  %s2565_s12 = inlined_call_operand.vmem [shape: bf16[32,64], index: 12, kind: input, shape index: {}]   ;;  %s2566_s13 = inlined_call_operand.vmem [shape: bf16[64,32], index: 13, kind: input, shape index: {}]   ;;  %s2567_s14 = inlined_call_operand.vmem [shape: f32[16,32], index: 14, kind: output, shape index: {0}]   ;;  %s2568_s15 = inlined_call_operand.vmem [shape: f32[2,4,16,8], index: 15, kind: output, shape index: {1}]   ;;  %s2569_s16 = inlined_call_operand.vmem [shape: f32[2,4,16,8], index: 16, kind: output, shape index: {2}]  }
   0x1   :  { %2572 = sst [smem:[#allocation2_spill]] %s2553_s0 }
   0x2 LB: > { %s1851_s22 = sadd.s32 4294967295, %s2121_s21   ;;  %p1855_p0 = scmp.ge.s32.totalorder %s2121_s21, 1  ;;  %s2121_s21 = sphi %s2233_s21, %s27_s21  }
   0x3   : > { %p512_p1 = scmp.lt.s32.totalorder %s2121_s21, 3 }
   0x5   : > { %p513_p2 = pnand %p1855_p0, %p512_p1 }
   0x6   : > { %p591_p3 = scmp.lt.s32.totalorder (!%p513_p2), %s1851_s22, 1  ;;  %s2573_s26 = sld [smem:[#allocation2_spill]] (!%p513_p2)  ;;  %vm633_vm0 = vcmask (!%p513_p2), 261120   ;;  %v2079_v3 = vld [vmem:[%s2560_s7] sm:$0xff] (!%p513_p2)   ;;  %v2123_v4 = vmov (!%p513_p2), 0.0   ;;  %vm2124_vm1 = vmmov (!%p513_p2), 0  }
   0x7   : > { %516 = sbr.rel (%p513_p2) target bundleno = 2620 (0xa3c), region = 76  ;;  %1954 = vmatprep.subr.bf16.mxu1 (!%p513_p2), %v2123_v4  ;;  %1958 = vmatprep.mubr.msk.bf16.mxu1 (!%p513_p2), %vm2124_vm1, %v2123_v4  ;;  %v2080_v5 = vld [vmem:[%s2560_s7 + $0x8] sm:$0xff] (!%p513_p2)   ;;  %v1868_v10 = vld [vmem:[%s2559_s6] ss:$0 sm:$0xff] (!%p513_p2)  ;;  %s2125_s24 = smov (!%p513_p2), 100   ;;  %vm728_vm2 = vcmask (!%p513_p2), 31744  }
   0x8   : > { %1955 = vmatpush3.bf16.msra.mxu1 (!%p513_p2), %v2079_v3  ;;  %1968 = vmatprep.subr.bf16.mxu0 (!%p513_p2), %v2123_v4  ;;  %v1869_v14 = vld [vmem:[%s2561_s8] ss:$0 sm:$0xff] (!%p513_p2)  ;;  %s2126_s28 = smov (!%p513_p2), 92   ;;  %s2127_s29 = smov (!%p513_p2), 32   ;;  %vm785_vm3 = vcmask (!%p513_p2), 64512   ;;  %vm787_vm4 = vcmask (!%p513_p2), 130048  }
   0x9   : > { %1956 = vmatprep.subr.bf16.mxu1 (!%p513_p2), %v2123_v4  ;;  %1970 = vmatprep.mubr.msk.bf16.mxu0 (!%p513_p2), %vm2124_vm1, %v2123_v4  ;;  %s2128_s30 = smov (!%p513_p2), 84   ;;  %s2571_s0 = smov (!%p513_p2), 48   ;;  %vm789_vm5 = vcmask (!%p513_p2), 195584   ;;  %vm1629_vm10 = vcmask (!%p513_p2), 523264  }
   0xa   : > { %s2130_s17 = smov (!%p513_p2), 116   ;;  %s2131_s18 = smov (!%p513_p2), 76  }
   0xb   : > { %s2132_s19 = smov (!%p513_p2), 68   ;;  %s2570_s20 = smov (!%p513_p2), 40  }
   0xc   : > { %1957 = vmatpush3.bf16.msra.mxu1 (!%p513_p2), %v2080_v5  ;;  %s2134_s25 = smov (!%p513_p2), 56  }
   0xd   : > { %1962 = vmatprep.subr.bf16.mxu1 (!%p513_p2), %v2123_v4 }
   0xe   : > { %s2577_s22 = smov (!%p591_p3, %s1851_s22), 1 }
   0xf   : > { %s2244_s23 = sshll.u32 %s2577_s22, 3 }
  0x10   : > { %s594_s27 = scalar_lea.vmem %s2573_s26, %s2244_s23  ;;  %s2135_s26 = smov 124  }
  0x11   : > { %v2250_v0 = vld [vmem:[%s594_s27] sm:$0xff]  ;;  %s601_s27 = scalar_lea.vmem %s2555_s2, %s2244_s23 }
  0x12   : > { %v632_v1 = vmul.f32 %v2250_v0, %v2250_v0  ;;  %v2289_v21 = vld [vmem:[%s601_s27] sm:$0xff]  ;;  %s2139_s27 = smov 16  }
  0x14   : > { %v634_v2 = vsel %vm633_vm0, %v632_v1, 0.0 }
  0x15   : > { %635 = vadd.xlane.f32.xlu0 %v634_v2 }
  0xa2   : > { %v636_v6 = vpop.xlane.xlu0 %635 }
  0xa3   : > { %v638_v7 = vmul.f32 0.03125, %v636_v6 }
  0xa5   : > { %v639_v8 = vadd.f32 1e-06, %v638_v7 }
  0xa7   : > { %2091 = vrsqrt.f32 %v639_v8 }
  0xb1   : > { %v2092_v9 = vpop.eup %2091 }
  0xb2   : > { %v641_v11 = vmul.f32 %v2092_v9, %v2250_v0 }
  0xb4   : > { %v649_v12 = vmul.f32 %v1868_v10, %v641_v11 }
  0xb6   : > { %v650_v13 = vpack.c.bf16 %v649_v12, %v649_v12 }
  0xb8   : > { %1959 = vmatmul.mubr.msk.bf16.vlgmr.msra.gmra.mrb[0].mxu1 %vm633_vm0, %v650_v13 }
  0xb9   : > { %1964 = vmatprep.mubr.msk.bf16.mxu1 %vm2124_vm1, %v2123_v4 }
 0x18b   : > { %v711_v15 = vpop.f32.mrb[0].mxu1 }
 0x18c   : > { %v2279_v16 = vadd.f32 %v1869_v14, %v711_v15  ;;  %v1960_v17 = vpop.f32.mrb[1].mxu1 }
 0x18d   : > { %v714_v18 = vpop.f32.mrb[2].mxu1 }
 0x18e   : > { %794 = vrot.lane.b32.xlu1 %v2279_v16, %s2125_s24  ;;  %v1961_v19 = vpop.f32.mrb[3].mxu1  ;;  %v719_v20 = vsub.f32 0.0, %v2279_v16 }
 0x190   : > { %791 = vrot.lane.b32.xlu0 %v719_v20, %s2126_s28 }
 0x192   : > { %811 = vrot.lane.b32.xlu1 %v2279_v16, %s2126_s28  ;;  %s2143_s28 = smov 120  }
 0x194   : > { %798 = vrot.lane.b32.xlu0 %v2289_v21, %s2127_s29 }
 0x196   : > { %828 = vrot.lane.b32.xlu1 %v2279_v16, %s2128_s30 }
 0x198   : > { %832 = vrot.lane.b32.xlu0 %v2289_v21, %s2571_s0 }
 0x19a   : > { %808 = vrot.lane.b32.xlu1 %v719_v20, %s2128_s30  ;;  %s605_s30 = scalar_lea.vmem %s2556_s3, %s2244_s23 }
 0x19b   : > { %v2306_v23 = vld [vmem:[%s605_s30] sm:$0xff]  ;;  %s2144_s30 = smov 104  }
 0x19c   : > { %733 = vrot.lane.b32.xlu0 %v719_v20, %s2130_s17 }
 0x19e   : > { %825 = vrot.lane.b32.xlu1 %v719_v20, %s2131_s18 }
 0x1a2   : > { %842 = vrot.lane.b32.xlu1 %v719_v20, %s2132_s19  ;;  %s2138_s19 = smov 4  }
 0x1a6   : > { %845 = vrot.lane.b32.xlu1 %v2279_v16, %s2131_s18  ;;  %s2136_s18 = smov 108  }
 0x1aa   : > { %815 = vrot.lane.b32.xlu1 %v2289_v21, %s2570_s20 }
 0x1ae   : > { %849 = vrot.lane.b32.xlu1 %v2289_v21, %s2134_s25 }
 0x1b2   : > { %736 = vrot.lane.b32.xlu1 %v2279_v16, %s2135_s26 }
 0x200   : > { %v795_v22 = vpop.permute.xlu1 %794 }
 0x202   : > { %v792_v24 = vpop.permute.xlu0 %791 }
 0x203   : > { %v797_v25 = vsel %vm728_vm2, %v792_v24, %v795_v22 }
 0x204   : > { %v802_v26 = vmul.f32 %v797_v25, %v2306_v23  ;;  %v812_v27 = vpop.permute.xlu1 %811 }
 0x206   : > { %804 = vrot.lane.b32.xlu1 %v802_v26, %s2127_s29  ;;  %s2137_s29 = smov 8   ;;  %v799_v41 = vpop.permute.xlu0 %798 }
 0x207   : > { %v801_v43 = vmul.f32 %v799_v41, %v2279_v16 }
 0x208   : > { %v829_v28 = vpop.permute.xlu1 %828 }
 0x20a   : > { %v833_v44 = vpop.permute.xlu0 %832 }
 0x20b   : > { %v835_v52 = vmul.f32 %v833_v44, %v2279_v16 }
 0x20c   : > { %v809_v29 = vpop.permute.xlu1 %808 }
 0x20d   : > { %v814_v30 = vsel %vm728_vm2, %v809_v29, %v812_v27 }
 0x20e   : > { %v819_v31 = vmul.f32 %v814_v30, %v2306_v23  ;;  %v734_v47 = vpop.permute.xlu0 %733 }
 0x210   : > { %v826_v32 = vpop.permute.xlu1 %825  ;;  %821 = vrot.lane.b32.xlu0 %v819_v31, %s2570_s20  ;;  %s2141_s20 = smov 24  }
 0x211   : > { %v831_v33 = vsel %vm728_vm2, %v826_v32, %v829_v28  ;;  %v730_v32 = vmul.f32 %v2289_v21, %v2279_v16 }
 0x212   : > { %v836_v34 = vmul.f32 %v831_v33, %v2306_v23 }
 0x214   : > { %v843_v35 = vpop.permute.xlu1 %842  ;;  %838 = vrot.lane.b32.xlu0 %v836_v34, %s2571_s0 }
 0x218   : > { %v846_v36 = vpop.permute.xlu1 %845  ;;  %751 = vrot.lane.b32.xlu0 %v719_v20, %s2136_s18 }
 0x219   : > { %v848_v37 = vsel %vm728_vm2, %v843_v35, %v846_v36 }
 0x21a   : > { %v853_v38 = vmul.f32 %v848_v37, %v2306_v23 }
 0x21c   : > { %768 = vrot.lane.b32.xlu0 %v719_v20, %s2125_s24  ;;  %855 = vrot.lane.b32.xlu1 %v853_v38, %s2134_s25  ;;  %v816_v39 = vpop.permute.xlu1 %815  ;;  %s2140_s24 = smov 96  }
 0x21d   : > { %v818_v48 = vmul.f32 %v816_v39, %v2279_v16 }
 0x220   : > { %721 = vrot.lane.b32.xlu0 %v719_v20, %s2135_s26  ;;  %754 = vrot.lane.b32.xlu1 %v2279_v16, %s2130_s17  ;;  %v850_v40 = vpop.permute.xlu1 %849  ;;  %s1919_s17 = sshll.u32 %s2577_s22, 6  ;;  %s1917_s26 = sshll.u32 %s2577_s22, 5 }
 0x221   : > { %s2344_s0 = scalar_lea.vmem %s2568_s15, %s1919_s17  ;;  %v852_v57 = vmul.f32 %v850_v40, %v2279_v16 }
 0x224   : > { %741 = vrot.lane.b32.xlu0 %v2289_v21, %s2137_s29  ;;  %771 = vrot.lane.b32.xlu1 %v2279_v16, %s2136_s18  ;;  %v737_v42 = vpop.permute.xlu1 %736  ;;  %s2337_s18 = scalar_lea.vmem %s2557_s4, %s1917_s26 }
 0x225   : > { %v894_v51 = vld [vmem:[%s2337_s18] sm:$0xff]  ;;  %v739_v55 = vsel %vm728_vm2, %v734_v47, %v737_v42  ;;  %v2360_v3 = vld [vmem:[%s2337_s18 + $0x10] sm:$0xff]  ;;  %v1875_v10 = vld [vmem:[%s2337_s18 + $0x8] sm:$0xff] }
 0x226   : > { %899 = vst.msk [vmem:[%s2344_s0] sm:$0xff] %vm785_vm3, %v894_v51  ;;  %v745_v56 = vmul.f32 %v739_v55, %v2306_v23  ;;  %1885 = vst.msk [vmem:[%s2344_s0 + $0x20] sm:$0xff] %vm785_vm3, %v2360_v3  ;;  %v2370_v11 = vld [vmem:[%s2337_s18 + $0x18] sm:$0xff] }
 0x227   : > { %1877 = vst.msk [vmem:[%s2344_s0 + $0x10] sm:$0xff] %vm785_vm3, %v1875_v10  ;;  %1893 = vst.msk [vmem:[%s2344_s0 + $0x30] sm:$0xff] %vm785_vm3, %v2370_v11 }
 0x228   : > { %725 = vrot.lane.b32.xlu1 %v2279_v16, %s2138_s19  ;;  %s597_s19 = scalar_lea.vmem %s2554_s1, %s2577_s22  ;;  %s2147_s22 = smov 64  }
 0x22c   : > { %758 = vrot.lane.b32.xlu1 %v2289_v21, %s2139_s27 }
 0x278   : > { %v805_v45 = vpop.permute.xlu1 %804 }
 0x279   : > { %v807_v46 = vadd.f32 %v805_v45, %v801_v43 }
 0x27b   : > { %860 = vrot.lane.b32.xlu0 %v807_v46, %s2140_s24 }
 0x282   : > { %v822_v49 = vpop.permute.xlu0 %821 }
 0x283   : > { %v824_v50 = vadd.f32 %v822_v49, %v818_v48 }
 0x285   : > { %864 = vrot.lane.b32.xlu1 %v824_v50, %s2140_s24 }
 0x286   : > { %v839_v53 = vpop.permute.xlu0 %838 }
 0x287   : > { %v841_v54 = vadd.f32 %v839_v53, %v835_v52  ;;  %v878_v53 = vlaneseq }
 0x289   : > { %868 = vrot.lane.b32.xlu0 %v841_v54, %s2140_s24  ;;  %v884_v54 = vld [vmem:[%s597_s19] sm:$0x1]  ;;  %v881_v55 = vshrl.u32 %v878_v53, 7  ;;  %s2441_s19 = scalar_lea.vmem %s2569_s16, %s1919_s17  ;;  %s2575_s17 = smov 40  }
 0x28a   : > { %v752_v60 = vpop.permute.xlu0 %751  ;;  %vm885_vm6 = vcmp.gt.f32.partialorder %v884_v54, 0.5 }
 0x28d   : > { %747 = vrot.lane.b32.xlu0 %v745_v56, %s2137_s29  ;;  %v889_v56 = vsub.s32 0, %v881_v55 }
 0x28e   : > { %v856_v58 = vpop.permute.xlu1 %855  ;;  %v769_v1 = vpop.permute.xlu0 %768 }
 0x28f   : > { %v858_v59 = vadd.f32 %v856_v58, %v852_v57  ;;  %v2145_v57 = vmov 0  }
 0x290   : > { %v886_v58 = vsel %vm885_vm6, 1, %v2145_v57 }
 0x291   : > { %872 = vrot.lane.b32.xlu1 %v858_v59, %s2140_s24  ;;  %s2142_s24 = smov 112   ;;  %v879_v59 = vand.u32 127, %v878_v53 }
 0x292   : > { %v755_v61 = vpop.permute.xlu1 %754  ;;  %v722_v7 = vpop.permute.xlu0 %721 }
 0x293   : > { %v757_v62 = vsel %vm728_vm2, %v752_v60, %v755_v61  ;;  %v882_v60 = vadd.s32 8, %v881_v55  ;;  %v890_v61 = vrot.slane %v886_v58, %v889_v56 }
 0x294   : > { %v762_v63 = vmul.f32 %v757_v62, %v2306_v23 }
 0x295   : > { %775 = vrot.lane.b32.xlu1 %v2289_v21, %s2141_s20  ;;  %vm883_vm7 = vcmp.le.s32.totalorder %v879_v59, %v882_v60  ;;  %vm891_vm8 = vcmp.eq.s32.totalorder %v890_v61, 1 }
 0x296   : > { %v772_v2 = vpop.permute.xlu1 %771  ;;  %764 = vrot.lane.b32.xlu0 %v762_v63, %s2139_s27  ;;  %v742_v9 = vpop.permute.xlu0 %741  ;;  %vm892_vm9 = vmand %vm883_vm7, %vm891_vm8  ;;  %v2146_v63 = vmov -1e+09  }
 0x297   : > { %v774_v5 = vsel %vm728_vm2, %v769_v1, %v772_v2  ;;  %v744_v26 = vmul.f32 %v742_v9, %v2279_v16  ;;  %v893_v1 = vsel %vm892_vm9, 0.0, %v2146_v63 }
 0x298   : > { %v779_v6 = vmul.f32 %v774_v5, %v2306_v23 }
 0x29a   : > { %781 = vrot.lane.b32.xlu1 %v779_v6, %s2141_s20  ;;  %v726_v8 = vpop.permute.xlu1 %725 }
 0x29b   : > { %v729_v20 = vsel %vm728_vm2, %v722_v7, %v726_v8 }
 0x29c   : > { %v731_v27 = vmul.f32 %v729_v20, %v2306_v23 }
 0x29e   : > { %v759_v13 = vpop.permute.xlu1 %758  ;;  %v732_v35 = vadd.f32 %v731_v27, %v730_v32 }
 0x29f   : > { %v761_v30 = vmul.f32 %v759_v13, %v2279_v16 }
 0x2ed   : > { %v861_v12 = vpop.permute.xlu0 %860 }
 0x2f7   : > { %v865_v15 = vpop.permute.xlu1 %864 }
 0x2f8   : > { %v875_v17 = vsel %vm785_vm3, %v861_v12, %v865_v15 }
 0x2fb   : > { %v869_v14 = vpop.permute.xlu0 %868 }
 0x2fc   : > { %v876_v18 = vsel %vm787_vm4, %v875_v17, %v869_v14 }
 0x2ff   : > { %v748_v22 = vpop.permute.xlu0 %747 }
 0x300   : > { %v750_v33 = vadd.f32 %v748_v22, %v744_v26 }
 0x302   : > { %v786_v37 = vsel %vm785_vm3, %v732_v35, %v750_v33 }
 0x303   : > { %v873_v19 = vpop.permute.xlu1 %872 }
 0x304   : > { %v877_v24 = vsel %vm789_vm5, %v876_v18, %v873_v19 }
 0x305   : > { %900 = vst.msk [vmem:[%s2344_s0 + $0x8] sm:$0xff] %vm785_vm3, %v877_v24  ;;  %1136 = vrot.lane.b32.xlu1 %v877_v24, %s2142_s24  ;;  %1012 = vrot.lane.b32.xlu0 %v877_v24, %s2143_s28  ;;  %v904_v25 = vpack.c.bf16 %v877_v24, %v894_v51 }
 0x307   : > { %v776_v28 = vpop.permute.xlu1 %775  ;;  %v909_v29 = vsel %vm785_vm3, %v904_v25, 0 }
 0x308   : > { %1963 = vmatpush3.bf16.xpose.msra.mxu1 %v909_v29  ;;  %v765_v31 = vpop.permute.xlu0 %764  ;;  %v778_v23 = vmul.f32 %v776_v28, %v2279_v16 }
 0x309   : > { %1259 = vrot.lane.b32.xlu1 %v877_v24, %s2144_s30  ;;  %1974 = vmatprep.subr.bf16.mxu1 %v2123_v4  ;;  %v767_v34 = vadd.f32 %v765_v31, %v761_v30 }
 0x30b   : > { %v788_v39 = vsel %vm787_vm4, %v786_v37, %v767_v34 }
 0x30c   : > { %v782_v36 = vpop.permute.xlu1 %781 }
 0x30d   : > { %v784_v38 = vadd.f32 %v782_v36, %v778_v23 }
 0x30f   : > { %v790_v21 = vsel %vm789_vm5, %v788_v39, %v784_v38 }
 0x310   : > { %v903_v40 = vpack.c.bf16 %v790_v21, %v790_v21 }
 0x312   : > { %1274 = vrot.lane.b32.xlu1 %v903_v40, %s2144_s30  ;;  %1028 = vrot.lane.b32.xlu0 %v903_v40, %s2143_s28  ;;  %s2434_s30 = scalar_lea.vmem %s2558_s5, %s1917_s26 }
 0x313   : > { %1965 = vmatmul.mubr.msk.bf16.vlgmr.msra.gmra.mrb[4].mxu1 %vm785_vm3, %v903_v40  ;;  %v1876_v37 = vld [vmem:[%s2434_s30 + $0x8] sm:$0xff]  ;;  %v1884_v53 = vld [vmem:[%s2434_s30 + $0x10] sm:$0xff]  ;;  %v1892_v56 = vld [vmem:[%s2434_s30 + $0x18] sm:$0xff] }
 0x314   : > { %1976 = vmatprep.mubr.msk.bf16.mxu1 %vm2124_vm1, %v2123_v4  ;;  %1879 = vst.msk [vmem:[%s2441_s19 + $0x10] sm:$0xff] %vm785_vm3, %v1876_v37  ;;  %1887 = vst.msk [vmem:[%s2441_s19 + $0x20] sm:$0xff] %vm785_vm3, %v1884_v53 }
 0x315   : > { %1895 = vst.msk [vmem:[%s2441_s19 + $0x30] sm:$0xff] %vm785_vm3, %v1892_v56 }
 0x316   : > { %1151 = vrot.lane.b32.xlu0 %v903_v40, %s2142_s24 }
 0x377   : > { %v1137_v41 = vpop.permute.xlu1 %1136  ;;  %v1013_v42 = vpop.permute.xlu0 %1012 }
 0x378   : > { %1886 = vst.msk [vmem:[%s2344_s0 + $0x28] sm:$0xff] %vm785_vm3, %v1137_v41  ;;  %1878 = vst.msk [vmem:[%s2344_s0 + $0x18] sm:$0xff] %vm785_vm3, %v1013_v42  ;;  %v1026_v43 = vpack.c.bf16 %v1013_v42, %v1875_v10  ;;  %v1150_v46 = vpack.c.bf16 %v1137_v41, %v2360_v3 }
 0x37a   : > { %v1034_v44 = vsel %vm785_vm3, %v1026_v43, 0  ;;  %v1157_v48 = vsel %vm785_vm3, %v1150_v46, 0 }
 0x37b   : > { %v1260_v45 = vpop.permute.xlu1 %1259  ;;  %1975 = vmatpush3.bf16.xpose.msra.mxu1 %v1034_v44 }
 0x37c   : > { %1894 = vst.msk [vmem:[%s2344_s0 + $0x38] sm:$0xff] %vm785_vm3, %v1260_v45  ;;  %1986 = vmatprep.subr.bf16.mxu1 %v2123_v4  ;;  %v1273_v49 = vpack.c.bf16 %v1260_v45, %v2370_v11 }
 0x37e   : > { %v1280_v51 = vsel %vm785_vm3, %v1273_v49, 0 }
 0x384   : > { %v1029_v47 = vpop.permute.xlu0 %1028  ;;  %v1275_v52 = vpop.permute.xlu1 %1274 }
 0x385   : > { %1977 = vmatmul.mubr.msk.bf16.vlgmr.msra.gmra.mrb[8].mxu1 %vm785_vm3, %v1029_v47 }
 0x386   : > { %1987 = vmatpush3.bf16.xpose.msra.mxu1 %v1157_v48  ;;  %1988 = vmatprep.mubr.msk.bf16.mxu1 %vm2124_vm1, %v2123_v4 }
 0x387   : > { %1998 = vmatprep.subr.bf16.mxu1 %v2123_v4 }
 0x388   : > { %v1152_v50 = vpop.permute.xlu0 %1151 }
 0x38d   : > { %1989 = vmatmul.mubr.msk.bf16.vlgmr.msra.gmra.mrb[12].mxu1 %vm785_vm3, %v1152_v50 }
 0x38e   : > { %1999 = vmatpush3.bf16.xpose.msra.mxu1 %v1280_v51  ;;  %2000 = vmatprep.mubr.msk.bf16.mxu1 %vm2124_vm1, %v2123_v4 }
 0x38f   : > { %2010 = vmatprep.subr.bf16.mxu1 %v2123_v4 }
 0x395   : > { %2001 = vmatmul.mubr.msk.bf16.vlgmr.msra.gmra.mrb[16].mxu1 %vm785_vm3, %v1275_v52  ;;  %v895_v52 = vld [vmem:[%s2434_s30] sm:$0xff] }
 0x396   : > { %2014 = vmatprep.mubr.msk.bf16.mxu1 %vm2124_vm1, %v2123_v4  ;;  %901 = vst.msk [vmem:[%s2441_s19] sm:$0xff] %vm785_vm3, %v895_v52 }
 0x3e6   : > { %v945_v62 = vpop.f32.mrb[4].mxu1 }
 0x3e7   : > { %v951_v2 = vmul.f32 0.35355338, %v945_v62  ;;  %v1966_v3 = vpop.f32.mrb[5].mxu1 }
 0x3e8   : > { %v948_v5 = vpop.f32.mrb[6].mxu1 }
 0x3e9   : > { %v1967_v6 = vpop.f32.mrb[7].mxu1  ;;  %v952_v7 = vadd.f32 %v951_v2, %v893_v1 }
 0x3eb   : > { %v953_v8 = vsel %vm787_vm4, %v952_v7, -inf }
 0x3ec   : > { %954 = vmax.xlane.f32.xlu0 %v953_v8 }
 0x458   : > { %v1070_v9 = vpop.f32.mrb[8].mxu1 }
 0x459   : > { %v1076_v10 = vmul.f32 0.35355338, %v1070_v9  ;;  %v1978_v11 = vpop.f32.mrb[9].mxu1 }
 0x45a   : > { %v1073_v12 = vpop.f32.mrb[10].mxu1 }
 0x45b   : > { %v1979_v13 = vpop.f32.mrb[11].mxu1  ;;  %v1077_v14 = vadd.f32 %v1076_v10, %v893_v1 }
 0x45d   : > { %v1078_v15 = vsel %vm787_vm4, %v1077_v14, -inf }
 0x45e   : > { %1079 = vmax.xlane.f32.xlu1 %v1078_v15 }
 0x460   : > { %v1193_v17 = vpop.f32.mrb[12].mxu1 }
 0x461   : > { %v1199_v18 = vmul.f32 0.35355338, %v1193_v17  ;;  %v1990_v19 = vpop.f32.mrb[13].mxu1 }
 0x462   : > { %v1196_v20 = vpop.f32.mrb[14].mxu1 }
 0x463   : > { %v1991_v22 = vpop.f32.mrb[15].mxu1  ;;  %v1200_v24 = vadd.f32 %v1199_v18, %v893_v1 }
 0x464   : > { %v2081_v22 = vld [vmem:[%s2562_s9] sm:$0xff]  }
 0x465   : > { %v1201_v25 = vsel %vm787_vm4, %v1200_v24, -inf  ;;  %2011 = vmatpush3.bf16.msra.mxu1 %v2081_v22 }
 0x466   : > { %1202 = vmax.xlane.f32.xlu0 %v1201_v25  ;;  %2012 = vmatprep.subr.bf16.mxu1 %v2123_v4 }
 0x468   : > { %v1316_v26 = vpop.f32.mrb[16].mxu1 }
 0x469   : > { %v1322_v27 = vmul.f32 0.35355338, %v1316_v26  ;;  %v2002_v28 = vpop.f32.mrb[17].mxu1 }
 0x46a   : > { %v1319_v29 = vpop.f32.mrb[18].mxu1  ;;  %v2082_v28 = vld [vmem:[%s2562_s9 + $0x8] sm:$0xff]  }
 0x46b   : > { %v2003_v30 = vpop.f32.mrb[19].mxu1  ;;  %v1323_v31 = vadd.f32 %v1322_v27, %v893_v1  ;;  %2013 = vmatpush3.bf16.msra.mxu1 %v2082_v28 }
 0x46c   : > { %2026 = vmatprep.subr.bf16.mxu1 %v2123_v4 }
 0x46d   : > { %v1324_v32 = vsel %vm787_vm4, %v1323_v31, -inf }
 0x46e   : > { %1325 = vmax.xlane.f32.xlu0 %v1324_v32 }
 0x479   : > { %v955_v33 = vpop.xlane.xlu0 %954 }
 0x47a   : > { %v956_v34 = vsub.f32 %v952_v7, %v955_v33 }
 0x47c   : > { %v957_v35 = vmul.f32 1.442695, %v956_v34 }
 0x47e   : > { %2093 = vpow2.f32 %v957_v35 }
 0x488   : > { %v2094_v23 = vpop.eup %2093 }
 0x489   : > { %v959_v36 = vsel %vm787_vm4, %v2094_v23, 0.0 }
 0x48a   : > { %960 = vadd.xlane.f32.xlu1 %v959_v36 }
 0x49b   : > { %1017 = vrot.lane.b32.xlu1 %v2279_v16, %s2134_s25  ;;  %s2574_s25 = smov 48  }
 0x4eb   : > { %v1080_v38 = vpop.xlane.xlu1 %1079 }
 0x4ec   : > { %v1081_v39 = vsub.f32 %v1077_v14, %v1080_v38 }
 0x4ee   : > { %v1082_v21 = vmul.f32 1.442695, %v1081_v39 }
 0x4f0   : > { %2095 = vpow2.f32 %v1082_v21 }
 0x4f3   : > { %v1203_v40 = vpop.xlane.xlu0 %1202 }
 0x4f4   : > { %v1204_v41 = vsub.f32 %v1200_v24, %v1203_v40 }
 0x4f6   : > { %v1205_v42 = vmul.f32 1.442695, %v1204_v41 }
 0x4f8   : > { %2097 = vpow2.f32 %v1205_v42 }
 0x4fa   : > { %v2096_v43 = vpop.eup %2095 }
 0x4fb   : > { %v1326_v44 = vpop.xlane.xlu0 %1325  ;;  %v1084_v45 = vsel %vm787_vm4, %v2096_v43, 0.0 }
 0x4fc   : > { %v1327_v46 = vsub.f32 %v1323_v31, %v1326_v44  ;;  %1085 = vadd.xlane.f32.xlu0 %v1084_v45 }
 0x4fe   : > { %v1328_v47 = vmul.f32 1.442695, %v1327_v46 }
 0x500   : > { %2099 = vpow2.f32 %v1328_v47 }
 0x502   : > { %v2098_v48 = vpop.eup %2097 }
 0x503   : > { %v1207_v49 = vsel %vm787_vm4, %v2098_v48, 0.0 }
 0x504   : > { %1208 = vadd.xlane.f32.xlu1 %v1207_v49  ;;  %v2083_v49 = vld [vmem:[%s2564_s11] sm:$0xff]  }
 0x50a   : > { %v2100_v50 = vpop.eup %2099 }
 0x50b   : > { %v1330_v51 = vsel %vm787_vm4, %v2100_v50, 0.0 }
 0x50c   : > { %1331 = vadd.xlane.f32.xlu1 %v1330_v51  ;;  %v2086_v51 = vld [vmem:[%s2565_s12 + $0x8] sm:$0xff]  }
 0x512   : > { %896 = vrot.lane.b32.xlu0 %v2279_v16, %s2147_s22 }
 0x516   : > { %1141 = vrot.lane.b32.xlu0 %v2279_v16, %s2574_s25  ;;  %s619_s25 = scalar_lea.vmem %s2567_s14, %s2244_s23 }
 0x517   : > { %v961_v54 = vpop.xlane.xlu1 %960 }
 0x518   : > { %2101 = vrcp.f32 %v961_v54 }
 0x51b   : > { %v1018_v55 = vpop.permute.xlu1 %1017 }
 0x51c   : > { %1880 = vst.msk [vmem:[%s2441_s19 + $0x18] sm:$0xff] %vm785_vm3, %v1018_v55 }
 0x51d   : > { %1264 = vrot.lane.b32.xlu1 %v2279_v16, %s2575_s17  ;;  %v1090_v16 = vpack.c.bf16 %v1018_v55, %v1876_v37 }
 0x522   : > { %v2102_v58 = vpop.eup %2101 }
 0x523   : > { %v963_v60 = vmul.f32 %v2102_v58, %v2094_v23 }
 0x525   : > { %v964_v1 = vpack.c.bf16 %v963_v60, %v963_v60  ;;  %v2087_v60 = vld [vmem:[%s2566_s13] sm:$0xff]  }
 0x589   : > { %v1086_v57 = vpop.xlane.xlu0 %1085 }
 0x58a   : > { %2103 = vrcp.f32 %v1086_v57 }
 0x58d   : > { %v897_v59 = vpop.permute.xlu0 %896 }
 0x58e   : > { %902 = vst.msk [vmem:[%s2441_s19 + $0x8] sm:$0xff] %vm785_vm3, %v897_v59  ;;  %v965_v61 = vpack.c.bf16 %v897_v59, %v895_v52 }
 0x590   : > { %1969 = vmatpush3.bf16.msra.mxu0 %v965_v61  ;;  %v2088_v61 = vld [vmem:[%s2566_s13 + $0x8] sm:$0xff]  }
 0x591   : > { %v1209_v62 = vpop.xlane.xlu1 %1208  ;;  %v1142_v63 = vpop.permute.xlu0 %1141  ;;  %1980 = vmatprep.subr.bf16.mxu0 %v2123_v4 }
 0x592   : > { %2105 = vrcp.f32 %v1209_v62  ;;  %1888 = vst.msk [vmem:[%s2441_s19 + $0x28] sm:$0xff] %vm785_vm3, %v1142_v63  ;;  %v1213_v7 = vpack.c.bf16 %v1142_v63, %v1884_v53  ;;  %v2089_v62 = vld [vmem:[%s2566_s13 + $0x10] sm:$0xff]   ;;  %v2090_v63 = vld [vmem:[%s2566_s13 + $0x18] sm:$0xff]  }
 0x593   : > { %1971 = vmatmul.mubr.msk.bf16.vlgmr.msra.gmra.mrb[0].mxu0 %vm787_vm4, %v964_v1 }
 0x594   : > { %v2104_v2 = vpop.eup %2103  ;;  %1981 = vmatpush3.bf16.msra.mxu0 %v1090_v16  ;;  %1982 = vmatprep.mubr.msk.bf16.mxu0 %vm2124_vm1, %v2123_v4 }
 0x595   : > { %v1088_v3 = vmul.f32 %v2104_v2, %v2096_v43  ;;  %1992 = vmatprep.subr.bf16.mxu0 %v2123_v4 }
 0x597   : > { %v1089_v6 = vpack.c.bf16 %v1088_v3, %v1088_v3 }
 0x599   : > { %v1332_v5 = vpop.xlane.xlu1 %1331 }
 0x59a   : > { %2107 = vrcp.f32 %v1332_v5 }
 0x59b   : > { %1983 = vmatmul.mubr.msk.bf16.vlgmr.msra.gmra.mrb[4].mxu0 %vm787_vm4, %v1089_v6 }
 0x59c   : > { %v2106_v8 = vpop.eup %2105  ;;  %1993 = vmatpush3.bf16.msra.mxu0 %v1213_v7  ;;  %1994 = vmatprep.mubr.msk.bf16.mxu0 %vm2124_vm1, %v2123_v4 }
 0x59d   : > { %v1211_v9 = vmul.f32 %v2106_v8, %v2098_v48  ;;  %v1265_v10 = vpop.permute.xlu1 %1264  ;;  %2004 = vmatprep.subr.bf16.mxu0 %v2123_v4 }
 0x59e   : > { %1896 = vst.msk [vmem:[%s2441_s19 + $0x38] sm:$0xff] %vm785_vm3, %v1265_v10  ;;  %v1336_v12 = vpack.c.bf16 %v1265_v10, %v1892_v56  ;;  %v1902_v56 = vld [vmem:[%s2563_s10] ss:$0 sm:$0xff] }
 0x59f   : > { %v1212_v11 = vpack.c.bf16 %v1211_v9, %v1211_v9 }
 0x5a3   : > { %1995 = vmatmul.mubr.msk.bf16.vlgmr.msra.gmra.mrb[8].mxu0 %vm787_vm4, %v1212_v11 }
 0x5a4   : > { %v2108_v13 = vpop.eup %2107  ;;  %2005 = vmatpush3.bf16.msra.mxu0 %v1336_v12  ;;  %2006 = vmatprep.mubr.msk.bf16.mxu0 %vm2124_vm1, %v2123_v4 }
 0x5a5   : > { %v1334_v14 = vmul.f32 %v2108_v13, %v2100_v50  ;;  %2018 = vmatprep.subr.bf16.mxu0 %v2123_v4  ;;  %v2084_v50 = vld [vmem:[%s2565_s12] sm:$0xff]  }
 0x5a7   : > { %v1335_v15 = vpack.c.bf16 %v1334_v14, %v1334_v14 }
 0x5ab   : > { %2007 = vmatmul.mubr.msk.bf16.vlgmr.msra.gmra.mrb[12].mxu0 %vm787_vm4, %v1335_v15 }
 0x5ac   : > { %2022 = vmatprep.mubr.msk.bf16.mxu0 %vm2124_vm1, %v2123_v4  ;;  %2019 = vmatpush3.bf16.msra.mxu0 %v2083_v49 }
 0x5ad   : > { %2020 = vmatprep.subr.bf16.mxu0 %v2123_v4 }
 0x666   : > { %v1003_v17 = vpop.f32.mrb[0].mxu0 }
 0x667   : > { %v1972_v18 = vpop.f32.mrb[1].mxu0 }
 0x668   : > { %v1006_v19 = vpop.f32.mrb[2].mxu0 }
 0x669   : > { %v1973_v20 = vpop.f32.mrb[3].mxu0 }
 0x66e   : > { %v1128_v24 = vpop.f32.mrb[4].mxu0 }
 0x66f   : > { %1381 = vrot.lane.b32.xlu0 %v1128_v24, %s2137_s29  ;;  %v1984_v25 = vpop.f32.mrb[5].mxu0 }
 0x670   : > { %v1131_v26 = vpop.f32.mrb[6].mxu0 }
 0x671   : > { %v1985_v27 = vpop.f32.mrb[7].mxu0 }
 0x676   : > { %v1251_v29 = vpop.f32.mrb[8].mxu0 }
 0x677   : > { %1385 = vrot.lane.b32.xlu1 %v1251_v29, %s2139_s27  ;;  %v1996_v30 = vpop.f32.mrb[9].mxu0 }
 0x678   : > { %v1254_v31 = vpop.f32.mrb[10].mxu0 }
 0x679   : > { %v1997_v32 = vpop.f32.mrb[11].mxu0 }
 0x67e   : > { %v1374_v33 = vpop.f32.mrb[12].mxu0 }
 0x67f   : > { %1389 = vrot.lane.b32.xlu0 %v1374_v33, %s2141_s20  ;;  %v2008_v34 = vpop.f32.mrb[13].mxu0 }
 0x680   : > { %v1377_v35 = vpop.f32.mrb[14].mxu0 }
 0x681   : > { %v2009_v23 = vpop.f32.mrb[15].mxu0 }
 0x6e1   : > { %v1382_v36 = vpop.permute.xlu0 %1381 }
 0x6e2   : > { %v1392_v38 = vsel %vm785_vm3, %v1003_v17, %v1382_v36 }
 0x6e9   : > { %v1386_v37 = vpop.permute.xlu1 %1385 }
 0x6ea   : > { %v1393_v39 = vsel %vm787_vm4, %v1392_v38, %v1386_v37 }
 0x6f1   : > { %v1390_v21 = vpop.permute.xlu0 %1389 }
 0x6f2   : > { %v1394_v40 = vsel %vm789_vm5, %v1393_v39, %v1390_v21 }
 0x6f3   : > { %v1395_v41 = vpack.c.bf16 %v1394_v40, %v1394_v40 }
 0x6f5   : > { %2015 = vmatmul.mubr.msk.bf16.vlgmr.msra.gmra.mrb[20].mxu1 %vm633_vm0, %v1395_v41 }
 0x6f6   : > { %2030 = vmatprep.mubr.msk.bf16.mxu1 %vm2124_vm1, %v2123_v4  ;;  %2027 = vmatpush3.bf16.msra.mxu1 %v2084_v50 }
 0x6f7   : > { %2028 = vmatprep.subr.bf16.mxu1 %v2123_v4 }
 0x6fa   : > { %2029 = vmatpush3.bf16.msra.mxu1 %v2086_v51 }
 0x7c8   : > { %v1449_v42 = vpop.f32.mrb[20].mxu1 }
 0x7c9   : > { %v1455_v43 = vadd.f32 %v1449_v42, %v2250_v0  ;;  %v2016_v44 = vpop.f32.mrb[21].mxu1  ;;  %v2085_v0 = vld [vmem:[%s2564_s11 + $0x8] sm:$0xff]  }
 0x7ca   : > { %v1452_v45 = vpop.f32.mrb[22].mxu1  ;;  %2021 = vmatpush3.bf16.msra.mxu0 %v2085_v0 }
 0x7cb   : > { %v2017_v46 = vpop.f32.mrb[23].mxu1  ;;  %v1456_v47 = vmul.f32 %v1455_v43, %v1455_v43  ;;  %2034 = vmatprep.subr.bf16.mxu0 %v2123_v4 }
 0x7cd   : > { %v1457_v48 = vsel %vm633_vm0, %v1456_v47, 0.0 }
 0x7ce   : > { %1458 = vadd.xlane.f32.xlu1 %v1457_v48 }
 0x85b   : > { %v1459_v52 = vpop.xlane.xlu1 %1458 }
 0x85c   : > { %v1460_v53 = vmul.f32 0.03125, %v1459_v52 }
 0x85e   : > { %v1461_v54 = vadd.f32 1e-06, %v1460_v53 }
 0x860   : > { %2109 = vrsqrt.f32 %v1461_v54 }
 0x86a   : > { %v2110_v55 = vpop.eup %2109 }
 0x86b   : > { %v1463_v57 = vmul.f32 %v2110_v55, %v1455_v43 }
 0x86d   : > { %v1471_v58 = vmul.f32 %v1902_v56, %v1463_v57 }
 0x86f   : > { %v1472_v59 = vpack.c.bf16 %v1471_v58, %v1471_v58 }
 0x871   : > { %2023 = vmatmul.mubr.msk.bf16.vlgmr.msra.gmra.mrb[16].mxu0 %vm633_vm0, %v1472_v59  ;;  %2031 = vmatmul.mubr.msk.bf16.vlgmr.msra.gmra.mrb[24].mxu1 %vm633_vm0, %v1472_v59 }
 0x872   : > { %2042 = vmatprep.mubr.msk.bf16.mxu0 %vm2124_vm1, %v2123_v4  ;;  %2035 = vmatpush3.bf16.msra.mxu0 %v2087_v60 }
 0x873   : > { %2036 = vmatprep.subr.bf16.mxu0 %v2123_v4 }
 0x876   : > { %2037 = vmatpush3.bf16.msra.mxu0 %v2088_v61 }
 0x877   : > { %2038 = vmatprep.subr.bf16.mxu0 %v2123_v4 }
 0x87a   : > { %2039 = vmatpush3.bf16.msra.mxu0 %v2089_v62 }
 0x87b   : > { %2040 = vmatprep.subr.bf16.mxu0 %v2123_v4 }
 0x87e   : > { %2041 = vmatpush3.bf16.msra.mxu0 %v2090_v63 }
 0x944   : > { %v1526_v1 = vpop.f32.mrb[16].mxu0  ;;  %v1582_v16 = vpop.f32.mrb[24].mxu1 }
 0x945   : > { %v1909_v2 = vmul.f32 -1.442695, %v1582_v16  ;;  %v2024_v3 = vpop.f32.mrb[17].mxu0  ;;  %v2032_v5 = vpop.f32.mrb[25].mxu1 }
 0x946   : > { %v1529_v6 = vpop.f32.mrb[18].mxu0  ;;  %v1585_v7 = vpop.f32.mrb[26].mxu1 }
 0x947   : > { %2111 = vpow2.f32 %v1909_v2  ;;  %v2025_v8 = vpop.f32.mrb[19].mxu0  ;;  %v2033_v9 = vpop.f32.mrb[27].mxu1 }
 0x951   : > { %v2112_v10 = vpop.eup %2111 }
 0x952   : > { %v1591_v11 = vadd.f32 1.0, %v2112_v10 }
 0x954   : > { %2113 = vrcp.f32 %v1591_v11 }
 0x95e   : > { %v2114_v4 = vpop.eup %2113 }
 0x95f   : > { %v1594_v12 = vmul.f32 %v2114_v4, %v1582_v16 }
 0x961   : > { %v1595_v13 = vmul.f32 %v1594_v12, %v1526_v1 }
 0x963   : > { %v1596_v14 = vpack.c.bf16 %v1595_v13, %v1595_v13 }
 0x965   : > { %2043 = vmatmul.mubr.msk.bf16.vlgmr.msra.gmra.mrb[20].mxu0 %vm1629_vm10, %v1596_v14 }
 0xa38   : > { %v1667_v15 = vpop.f32.mrb[20].mxu0 }
 0xa39   : > { %v1673_v17 = vadd.f32 %v1667_v15, %v1455_v43  ;;  %v2044_v18 = vpop.f32.mrb[21].mxu0 }
 0xa3a   : > { %v1670_v19 = vpop.f32.mrb[22].mxu0 }
 0xa3b   : > { %1674 = vst.msk [vmem:[%s619_s25] sm:$0xff] %vm633_vm0, %v1673_v17  ;;  %v2045_v20 = vpop.f32.mrb[23].mxu0 }
 0xa3c PF: > { %s27_s21 = sadd.s32 1, %s2121_s21  }
 0xa3d   : > { %p24_p4 = scmp.ge.s32.totalorder %s27_s21, 4  }
 0xa3f   :  { %26 = sbr.rel (!%p24_p4) target bundleno = 2 (0x2), region = 157 }

</bundles_post_ra>
